<compile_context>
chip_gen: v7x
topology: tpu7x:2x2x1
jax: 0.10.0
libtpu: 0.0.40
codegen_flags: <defaults>
</compile_context>

<pallas_src>
import functools

import jax
import jax.numpy as jnp
from jax import lax
from jax.experimental import pallas as pl
from jax.experimental.pallas import tpu as pltpu

ACT_DTYPE = jnp.bfloat16            # activation / weight streaming dtype


# ---------------------------------------------------------------------------
# Parameter preprocessing (host/XLA side, done once per forward).
# ---------------------------------------------------------------------------
def fold_bn(gamma, beta, mean, var, eps=1e-5):
    scale = gamma / jnp.sqrt(var + eps)
    shift = beta - mean * scale
    return scale.astype(jnp.float32), shift.astype(jnp.float32)


def band_conv_weight(w, W):
    """(3,3,3,Cin,Cout) DHWIO -> (3, 3, W*Cin, W*Cout) kw-banded matrix.

    Built for an UNPADDED W*Cin input: edge kw taps that would read outside
    [0, W) are zeroed, so no W-halo padding of the activation is needed, and
    the kw taps + channel contraction fold into a single MXU K axis.
    """
    KD, KH, KW, Cin, Cout = w.shape
    B = jnp.zeros((KD, KH, W * Cin, W * Cout), w.dtype)
    for kw in range(KW):
        for wo in range(W):
            wi = wo + kw - 1
            if 0 <= wi < W:
                B = B.at[:, :, wi * Cin:(wi + 1) * Cin,
                         wo * Cout:(wo + 1) * Cout].set(w[:, :, kw])
    return B


def block_diag_weight(ws, W):
    """1x1x1 conv weight (Cin, Cout) -> block-diagonal (W*Cin, W*Cout)."""
    Cin, Cout = ws.shape
    B = jnp.zeros((W * Cin, W * Cout), ws.dtype)
    for wo in range(W):
        B = B.at[wo * Cin:(wo + 1) * Cin, wo * Cout:(wo + 1) * Cout].set(ws)
    return B


def tile_shift(vec, W):
    """Per-channel (Cout,) BN shift -> (1, W*Cout) row matching the lane axis."""
    return jnp.tile(vec.reshape(1, -1), (1, W)).astype(jnp.float32)


# ---------------------------------------------------------------------------
# Fused kernel: conv1+bn1+relu -> conv2+bn2 + shortcut(1x1x1)+bn + add + relu.
# One grid step per batch element; M = D*H rows per matmul; BN scales are
# pre-folded into the weights so one f32 accumulator serves main + shortcut.
# ---------------------------------------------------------------------------
def _fused_block_kernel(x_ref, b1_ref, b2_ref, bs_ref, sh1_ref, sh2_ref,
                        o_ref, xscr, hscr, *, D, H, WCi, WCo):
    # Zero the halo scratches (unconditionally, so every core of a megacore
    # split sees zeroed halos), then overwrite the interior for this batch.
    xscr[...] = jnp.zeros_like(xscr)
    hscr[...] = jnp.zeros_like(hscr)
    x_blk = x_ref[0]                                     # (D, H, W*Cin) bf16
    xscr[1:D + 1, 1:H + 1, :] = x_blk

    # ---- conv1 (3x3x3, stride 1, pad 1) + bn1 (scale in weight) + relu ----
    acc = jnp.zeros((D * H, WCo), jnp.float32)
    for kd in range(3):
        for kh in range(3):
            slab = xscr[kd:kd + D, kh:kh + H, :].reshape(D * H, WCi)
            acc += jnp.dot(slab, b1_ref[kd, kh],
                           preferred_element_type=jnp.float32)
    h1 = jnp.maximum(acc + sh1_ref[...], 0.0)            # + bn1 shift, relu
    hscr[1:D + 1, 1:H + 1, :] = h1.reshape(D, H, WCo).astype(hscr.dtype)

    # ---- conv2 + bn2, fused 1x1x1 shortcut + shortcut_bn, add, relu ----
    acc2 = jnp.dot(x_blk.reshape(D * H, WCi), bs_ref[...],
                   preferred_element_type=jnp.float32)   # shortcut conv
    for kd in range(3):
        for kh in range(3):
            slab = hscr[kd:kd + D, kh:kh + H, :].reshape(D * H, WCo)
            acc2 += jnp.dot(slab, b2_ref[kd, kh],
                            preferred_element_type=jnp.float32)
    out = jnp.maximum(acc2 + sh2_ref[...], 0.0)          # + (bn2+bn_sc) shift
    o_ref[0] = out.reshape(D, H, WCo).astype(o_ref.dtype)


def fused_basic_block(xb, B1, B2, Bs, sh1, sh2, *, D, H, W, Cin, Cout,
                      out_dtype=ACT_DTYPE):
    """xb: (N, D, H, W*Cin) bf16.  Returns (N, D, H, W*Cout) out_dtype."""
    N = xb.shape[0]
    WCi, WCo = W * Cin, W * Cout

    kernel = functools.partial(_fused_block_kernel, D=D, H=H, WCi=WCi, WCo=WCo)

    # True conv FLOPs (zero band entries excluded) — advisory only.
    flops = 2 * N * D * H * W * (27 * Cin * Cout + 27 * Cout * Cout
                                 + Cin * Cout)
    bytes_accessed = ((xb.size + B1.size + B2.size + Bs.size) * 2
                      + (sh1.size + sh2.size) * 4
                      + N * D * H * WCo * jnp.dtype(out_dtype).itemsize)

    return pl.pallas_call(
        kernel,
        out_shape=jax.ShapeDtypeStruct((N, D, H, WCo), out_dtype),
        grid=(N,),
        in_specs=[
            pl.BlockSpec((1, D, H, WCi), lambda n: (n, 0, 0, 0)),
            pl.BlockSpec(B1.shape, lambda n: (0, 0, 0, 0)),
            pl.BlockSpec(B2.shape, lambda n: (0, 0, 0, 0)),
            pl.BlockSpec(Bs.shape, lambda n: (0, 0)),
            pl.BlockSpec(sh1.shape, lambda n: (0, 0)),
            pl.BlockSpec(sh2.shape, lambda n: (0, 0)),
        ],
        out_specs=pl.BlockSpec((1, D, H, WCo), lambda n: (n, 0, 0, 0)),
        scratch_shapes=[
            pltpu.VMEM((D + 2, H + 2, WCi), ACT_DTYPE),   # padded x halo
            pltpu.VMEM((D + 2, H + 2, WCo), ACT_DTYPE),   # padded h1 halo
        ],
        compiler_params=pltpu.CompilerParams(
            dimension_semantics=("parallel",),
            # <= physical VMEM on every generation (v7x: 64 MiB per core).
            vmem_limit_bytes=64 * 1024 * 1024),
        cost_estimate=pl.CostEstimate(flops=flops, transcendentals=0,
                                      bytes_accessed=bytes_accessed),
    )(xb, B1, B2, Bs, sh1, sh2)


# ---------------------------------------------------------------------------
# BasicBlock forward (Pallas) and pure-JAX reference.
# ---------------------------------------------------------------------------
def basic_block_forward(x, params):
    N, D, H, W, Cin = x.shape
    Cout = params["s1"].shape[0]
    xb = x.astype(ACT_DTYPE).reshape(N, D, H, W * Cin)

    # Fold BN scales into the (bf16) conv weights; keep shifts separate (f32).
    w1 = (params["w1"] * params["s1"]).astype(ACT_DTYPE)
    w2 = (params["w2"] * params["s2"]).astype(ACT_DTYPE)
    ws = (params["ws"] * params["ss"]).astype(ACT_DTYPE)
    B1 = band_conv_weight(w1, W)
    B2 = band_conv_weight(w2, W)
    Bs = block_diag_weight(ws, W)
    sh1 = tile_shift(params["b1"], W)
    sh2 = tile_shift(params["b2"] + params["bs"], W)      # bn2 + shortcut_bn

    out = fused_basic_block(xb, B1, B2, Bs, sh1, sh2,
                            D=D, H=H, W=W, Cin=Cin, Cout=Cout)
    return out.reshape(N, D, H, W, Cout)


def basic_block_reference(x, params):
    """Pure-JAX reference mirroring the kernel's bf16 quantization points."""
    q = lambda a: a.astype(ACT_DTYPE).astype(jnp.float32)

    def conv3(a, w):
        return lax.conv_general_dilated(
            a, w, window_strides=(1, 1, 1),
            padding=((1, 1), (1, 1), (1, 1)),
            dimension_numbers=("NDHWC", "DHWIO", "NDHWC"))

    xq = q(x)
    h = conv3(xq, q(params["w1"] * params["s1"])) + params["b1"]
    h = q(jnp.maximum(h, 0.0))                  # h1 held as bf16 in the kernel
    out = conv3(h, q(params["w2"] * params["s2"])) + params["b2"]
    res = jnp.einsum("ndhwi,io->ndhwo", xq, q(params["ws"] * params["ss"]))
    res = res + params["bs"]
    return jnp.maximum(out + res, 0.0)


if __name__ == "__main__":
    # Small shapes: N=2, C_in=4, C_out=8, D=4, H=W=8 (NDHWC activations).
    N, D, H, W, Cin, Cout = 2, 4, 8, 8, 4, 8

    key = jax.random.PRNGKey(0)
    keys = jax.random.split(key, 16)

    x = jax.random.normal(keys[0], (N, D, H, W, Cin), jnp.float32)
    w1 = jax.random.normal(keys[1], (3, 3, 3, Cin, Cout), jnp.float32) * 0.1
    w2 = jax.random.normal(keys[2], (3, 3, 3, Cout, Cout), jnp.float32) * 0.1
    ws = jax.random.normal(keys[3], (Cin, Cout), jnp.float32) * 0.1

    def bn_params(kg, kb, km, kv, C):
        gamma = 1.0 + 0.1 * jax.random.normal(kg, (C,), jnp.float32)
        beta = 0.1 * jax.random.normal(kb, (C,), jnp.float32)
        mean = 0.05 * jax.random.normal(km, (C,), jnp.float32)
        var = 1.0 + 0.1 * jax.random.uniform(kv, (C,), jnp.float32)
        return fold_bn(gamma, beta, mean, var)

    s1, b1 = bn_params(keys[4], keys[5], keys[6], keys[7], Cout)
    s2, b2 = bn_params(keys[8], keys[9], keys[10], keys[11], Cout)
    ss, bs = bn_params(keys[12], keys[13], keys[14], keys[15], Cout)

    params = dict(w1=w1, w2=w2, ws=ws, s1=s1, b1=b1, s2=s2, b2=b2, ss=ss, bs=bs)

    fwd = jax.jit(basic_block_forward)
    out = jax.block_until_ready(fwd(x, params))
    ref = jax.block_until_ready(basic_block_reference(x, params))

    assert out.shape == (N, D, H, W, Cout)
    out_f32 = out.astype(jnp.float32)
    max_diff = jnp.max(jnp.abs(out_f32 - ref))
    assert jnp.allclose(out_f32, ref, atol=3e-2, rtol=3e-2), (
        f"mismatch vs reference, max abs diff = {max_diff}")

    print("KERNEL_OK")
</pallas_src>

<mosaic_0001>
module attributes {stable_mosaic.version = 11 : i64} {
  func.func @_fused_block_kernel(%arg0: i32, %arg1: memref<1x4x8x32xbf16, #tpu.memory_space<vmem>>, %arg2: memref<3x3x32x64xbf16, #tpu.memory_space<vmem>>, %arg3: memref<3x3x64x64xbf16, #tpu.memory_space<vmem>>, %arg4: memref<32x64xbf16, #tpu.memory_space<vmem>>, %arg5: memref<1x64xf32, #tpu.memory_space<vmem>>, %arg6: memref<1x64xf32, #tpu.memory_space<vmem>>, %arg7: memref<1x4x8x64xbf16, #tpu.memory_space<vmem>>, %arg8: memref<6x10x32xbf16, #tpu.memory_space<vmem>>, %arg9: memref<6x10x64xbf16, #tpu.memory_space<vmem>>) attributes {dimension_semantics = [#tpu.dimension_semantics<parallel>], iteration_bounds = array<i64: 2>, scalar_prefetch = 0 : i64, scratch_operands = 2 : i64, tpu.core_type = #tpu.core_type<tc>, window_params = [{transform_indices = @transform_0, window_bounds = array<i64: 1, 4, 8, 32>}, {pipeline_mode = #tpu.pipeline_mode<synchronous>, transform_indices = @transform_1, window_bounds = array<i64: 3, 3, 32, 64>}, {pipeline_mode = #tpu.pipeline_mode<synchronous>, transform_indices = @transform_2, window_bounds = array<i64: 3, 3, 64, 64>}, {pipeline_mode = #tpu.pipeline_mode<synchronous>, transform_indices = @transform_3, window_bounds = array<i64: 32, 64>}, {pipeline_mode = #tpu.pipeline_mode<synchronous>, transform_indices = @transform_4, window_bounds = array<i64: 1, 64>}, {pipeline_mode = #tpu.pipeline_mode<synchronous>, transform_indices = @transform_5, window_bounds = array<i64: 1, 64>}, {transform_indices = @transform_6, window_bounds = array<i64: 1, 4, 8, 64>}]} {
    %cst = arith.constant 0.000000e+00 : bf16
    %0 = vector.broadcast %cst : bf16 to vector<6x10x32xbf16>
    %c0 = arith.constant 0 : index
    %c0_0 = arith.constant 0 : index
    %c0_1 = arith.constant 0 : index
    %1 = vector.load %arg8[%c0, %c0_0, %c0_1] : memref<6x10x32xbf16, #tpu.memory_space<vmem>>, vector<6x10x32xbf16>
    tpu.vector_store %arg8[%c0, %c0_0, %c0_1], %0 {strides = array<i32>} : memref<6x10x32xbf16, #tpu.memory_space<vmem>>, vector<6x10x32xbf16>,
    %cst_2 = arith.constant 0.000000e+00 : bf16
    %2 = vector.broadcast %cst_2 : bf16 to vector<6x10x64xbf16>
    %c0_3 = arith.constant 0 : index
    %c0_4 = arith.constant 0 : index
    %c0_5 = arith.constant 0 : index
    %3 = vector.load %arg9[%c0_3, %c0_4, %c0_5] : memref<6x10x64xbf16, #tpu.memory_space<vmem>>, vector<6x10x64xbf16>
    tpu.vector_store %arg9[%c0_3, %c0_4, %c0_5], %2 {strides = array<i32>} : memref<6x10x64xbf16, #tpu.memory_space<vmem>>, vector<6x10x64xbf16>,
    %c0_6 = arith.constant 0 : index
    %c0_7 = arith.constant 0 : index
    %c0_8 = arith.constant 0 : index
    %c0_9 = arith.constant 0 : index
    %4 = vector.load %arg1[%c0_6, %c0_7, %c0_8, %c0_9] : memref<1x4x8x32xbf16, #tpu.memory_space<vmem>>, vector<1x4x8x32xbf16>
    %5 = vector.shape_cast %4 : vector<1x4x8x32xbf16> to vector<4x8x32xbf16>
    %c1 = arith.constant 1 : index
    %c1_10 = arith.constant 1 : index
    %c0_11 = arith.constant 0 : index
    %6 = vector.load %arg8[%c1, %c1_10, %c0_11] : memref<6x10x32xbf16, #tpu.memory_space<vmem>>, vector<4x8x32xbf16>
    tpu.vector_store %arg8[%c1, %c1_10, %c0_11], %5 {strides = array<i32>} : memref<6x10x32xbf16, #tpu.memory_space<vmem>>, vector<4x8x32xbf16>,
    %cst_12 = arith.constant 0.000000e+00 : f32
    %7 = vector.broadcast %cst_12 : f32 to vector<32x64xf32>
    %c0_13 = arith.constant 0 : index
    %c0_14 = arith.constant 0 : index
    %c0_15 = arith.constant 0 : index
    %8 = vector.load %arg8[%c0_13, %c0_14, %c0_15] : memref<6x10x32xbf16, #tpu.memory_space<vmem>>, vector<4x8x32xbf16>
    %9 = vector.shape_cast %8 : vector<4x8x32xbf16> to vector<32x32xbf16>
    %c0_16 = arith.constant 0 : index
    %c0_17 = arith.constant 0 : index
    %c0_18 = arith.constant 0 : index
    %c0_19 = arith.constant 0 : index
    %10 = vector.load %arg2[%c0_16, %c0_17, %c0_18, %c0_19] : memref<3x3x32x64xbf16, #tpu.memory_space<vmem>>, vector<1x1x32x64xbf16>
    %11 = vector.shape_cast %10 : vector<1x1x32x64xbf16> to vector<32x64xbf16>
    %cst_20 = arith.constant dense<0.000000e+00> : vector<32x64xf32>
    %12 = tpu.matmul %9, %11, %cst_20 {dimension_numbers = #tpu.dot_dimension_numbers<[1], [0], [0], [1], [0, 0, 1, 1], [], []>} : vector<32x32xbf16>, vector<32x64xbf16>, vector<32x64xf32> -> vector<32x64xf32>
    %13 = arith.addf %7, %12 : vector<32x64xf32>
    %c0_21 = arith.constant 0 : index
    %c1_22 = arith.constant 1 : index
    %c0_23 = arith.constant 0 : index
    %14 = vector.load %arg8[%c0_21, %c1_22, %c0_23] : memref<6x10x32xbf16, #tpu.memory_space<vmem>>, vector<4x8x32xbf16>
    %15 = vector.shape_cast %14 : vector<4x8x32xbf16> to vector<32x32xbf16>
    %c0_24 = arith.constant 0 : index
    %c1_25 = arith.constant 1 : index
    %c0_26 = arith.constant 0 : index
    %c0_27 = arith.constant 0 : index
    %16 = vector.load %arg2[%c0_24, %c1_25, %c0_26, %c0_27] : memref<3x3x32x64xbf16, #tpu.memory_space<vmem>>, vector<1x1x32x64xbf16>
    %17 = vector.shape_cast %16 : vector<1x1x32x64xbf16> to vector<32x64xbf16>
    %cst_28 = arith.constant dense<0.000000e+00> : vector<32x64xf32>
    %18 = tpu.matmul %15, %17, %cst_28 {dimension_numbers = #tpu.dot_dimension_numbers<[1], [0], [0], [1], [0, 0, 1, 1], [], []>} : vector<32x32xbf16>, vector<32x64xbf16>, vector<32x64xf32> -> vector<32x64xf32>
    %19 = arith.addf %13, %18 : vector<32x64xf32>
    %c0_29 = arith.constant 0 : index
    %c2 = arith.constant 2 : index
    %c0_30 = arith.constant 0 : index
    %20 = vector.load %arg8[%c0_29, %c2, %c0_30] : memref<6x10x32xbf16, #tpu.memory_space<vmem>>, vector<4x8x32xbf16>
    %21 = vector.shape_cast %20 : vector<4x8x32xbf16> to vector<32x32xbf16>
    %c0_31 = arith.constant 0 : index
    %c2_32 = arith.constant 2 : index
    %c0_33 = arith.constant 0 : index
    %c0_34 = arith.constant 0 : index
    %22 = vector.load %arg2[%c0_31, %c2_32, %c0_33, %c0_34] : memref<3x3x32x64xbf16, #tpu.memory_space<vmem>>, vector<1x1x32x64xbf16>
    %23 = vector.shape_cast %22 : vector<1x1x32x64xbf16> to vector<32x64xbf16>
    %cst_35 = arith.constant dense<0.000000e+00> : vector<32x64xf32>
    %24 = tpu.matmul %21, %23, %cst_35 {dimension_numbers = #tpu.dot_dimension_numbers<[1], [0], [0], [1], [0, 0, 1, 1], [], []>} : vector<32x32xbf16>, vector<32x64xbf16>, vector<32x64xf32> -> vector<32x64xf32>
    %25 = arith.addf %19, %24 : vector<32x64xf32>
    %c1_36 = arith.constant 1 : index
    %c0_37 = arith.constant 0 : index
    %c0_38 = arith.constant 0 : index
    %26 = vector.load %arg8[%c1_36, %c0_37, %c0_38] : memref<6x10x32xbf16, #tpu.memory_space<vmem>>, vector<4x8x32xbf16>
    %27 = vector.shape_cast %26 : vector<4x8x32xbf16> to vector<32x32xbf16>
    %c1_39 = arith.constant 1 : index
    %c0_40 = arith.constant 0 : index
    %c0_41 = arith.constant 0 : index
    %c0_42 = arith.constant 0 : index
    %28 = vector.load %arg2[%c1_39, %c0_40, %c0_41, %c0_42] : memref<3x3x32x64xbf16, #tpu.memory_space<vmem>>, vector<1x1x32x64xbf16>
    %29 = vector.shape_cast %28 : vector<1x1x32x64xbf16> to vector<32x64xbf16>
    %cst_43 = arith.constant dense<0.000000e+00> : vector<32x64xf32>
    %30 = tpu.matmul %27, %29, %cst_43 {dimension_numbers = #tpu.dot_dimension_numbers<[1], [0], [0], [1], [0, 0, 1, 1], [], []>} : vector<32x32xbf16>, vector<32x64xbf16>, vector<32x64xf32> -> vector<32x64xf32>
    %31 = arith.addf %25, %30 : vector<32x64xf32>
    %c1_44 = arith.constant 1 : index
    %c1_45 = arith.constant 1 : index
    %c0_46 = arith.constant 0 : index
    %32 = vector.load %arg8[%c1_44, %c1_45, %c0_46] : memref<6x10x32xbf16, #tpu.memory_space<vmem>>, vector<4x8x32xbf16>
    %33 = vector.shape_cast %32 : vector<4x8x32xbf16> to vector<32x32xbf16>
    %c1_47 = arith.constant 1 : index
    %c1_48 = arith.constant 1 : index
    %c0_49 = arith.constant 0 : index
    %c0_50 = arith.constant 0 : index
    %34 = vector.load %arg2[%c1_47, %c1_48, %c0_49, %c0_50] : memref<3x3x32x64xbf16, #tpu.memory_space<vmem>>, vector<1x1x32x64xbf16>
    %35 = vector.shape_cast %34 : vector<1x1x32x64xbf16> to vector<32x64xbf16>
    %cst_51 = arith.constant dense<0.000000e+00> : vector<32x64xf32>
    %36 = tpu.matmul %33, %35, %cst_51 {dimension_numbers = #tpu.dot_dimension_numbers<[1], [0], [0], [1], [0, 0, 1, 1], [], []>} : vector<32x32xbf16>, vector<32x64xbf16>, vector<32x64xf32> -> vector<32x64xf32>
    %37 = arith.addf %31, %36 : vector<32x64xf32>
    %c1_52 = arith.constant 1 : index
    %c2_53 = arith.constant 2 : index
    %c0_54 = arith.constant 0 : index
    %38 = vector.load %arg8[%c1_52, %c2_53, %c0_54] : memref<6x10x32xbf16, #tpu.memory_space<vmem>>, vector<4x8x32xbf16>
    %39 = vector.shape_cast %38 : vector<4x8x32xbf16> to vector<32x32xbf16>
    %c1_55 = arith.constant 1 : index
    %c2_56 = arith.constant 2 : index
    %c0_57 = arith.constant 0 : index
    %c0_58 = arith.constant 0 : index
    %40 = vector.load %arg2[%c1_55, %c2_56, %c0_57, %c0_58] : memref<3x3x32x64xbf16, #tpu.memory_space<vmem>>, vector<1x1x32x64xbf16>
    %41 = vector.shape_cast %40 : vector<1x1x32x64xbf16> to vector<32x64xbf16>
    %cst_59 = arith.constant dense<0.000000e+00> : vector<32x64xf32>
    %42 = tpu.matmul %39, %41, %cst_59 {dimension_numbers = #tpu.dot_dimension_numbers<[1], [0], [0], [1], [0, 0, 1, 1], [], []>} : vector<32x32xbf16>, vector<32x64xbf16>, vector<32x64xf32> -> vector<32x64xf32>
    %43 = arith.addf %37, %42 : vector<32x64xf32>
    %c2_60 = arith.constant 2 : index
    %c0_61 = arith.constant 0 : index
    %c0_62 = arith.constant 0 : index
    %44 = vector.load %arg8[%c2_60, %c0_61, %c0_62] : memref<6x10x32xbf16, #tpu.memory_space<vmem>>, vector<4x8x32xbf16>
    %45 = vector.shape_cast %44 : vector<4x8x32xbf16> to vector<32x32xbf16>
    %c2_63 = arith.constant 2 : index
    %c0_64 = arith.constant 0 : index
    %c0_65 = arith.constant 0 : index
    %c0_66 = arith.constant 0 : index
    %46 = vector.load %arg2[%c2_63, %c0_64, %c0_65, %c0_66] : memref<3x3x32x64xbf16, #tpu.memory_space<vmem>>, vector<1x1x32x64xbf16>
    %47 = vector.shape_cast %46 : vector<1x1x32x64xbf16> to vector<32x64xbf16>
    %cst_67 = arith.constant dense<0.000000e+00> : vector<32x64xf32>
    %48 = tpu.matmul %45, %47, %cst_67 {dimension_numbers = #tpu.dot_dimension_numbers<[1], [0], [0], [1], [0, 0, 1, 1], [], []>} : vector<32x32xbf16>, vector<32x64xbf16>, vector<32x64xf32> -> vector<32x64xf32>
    %49 = arith.addf %43, %48 : vector<32x64xf32>
    %c2_68 = arith.constant 2 : index
    %c1_69 = arith.constant 1 : index
    %c0_70 = arith.constant 0 : index
    %50 = vector.load %arg8[%c2_68, %c1_69, %c0_70] : memref<6x10x32xbf16, #tpu.memory_space<vmem>>, vector<4x8x32xbf16>
    %51 = vector.shape_cast %50 : vector<4x8x32xbf16> to vector<32x32xbf16>
    %c2_71 = arith.constant 2 : index
    %c1_72 = arith.constant 1 : index
    %c0_73 = arith.constant 0 : index
    %c0_74 = arith.constant 0 : index
    %52 = vector.load %arg2[%c2_71, %c1_72, %c0_73, %c0_74] : memref<3x3x32x64xbf16, #tpu.memory_space<vmem>>, vector<1x1x32x64xbf16>
    %53 = vector.shape_cast %52 : vector<1x1x32x64xbf16> to vector<32x64xbf16>
    %cst_75 = arith.constant dense<0.000000e+00> : vector<32x64xf32>
    %54 = tpu.matmul %51, %53, %cst_75 {dimension_numbers = #tpu.dot_dimension_numbers<[1], [0], [0], [1], [0, 0, 1, 1], [], []>} : vector<32x32xbf16>, vector<32x64xbf16>, vector<32x64xf32> -> vector<32x64xf32>
    %55 = arith.addf %49, %54 : vector<32x64xf32>
    %c2_76 = arith.constant 2 : index
    %c2_77 = arith.constant 2 : index
    %c0_78 = arith.constant 0 : index
    %56 = vector.load %arg8[%c2_76, %c2_77, %c0_78] : memref<6x10x32xbf16, #tpu.memory_space<vmem>>, vector<4x8x32xbf16>
    %57 = vector.shape_cast %56 : vector<4x8x32xbf16> to vector<32x32xbf16>
    %c2_79 = arith.constant 2 : index
    %c2_80 = arith.constant 2 : index
    %c0_81 = arith.constant 0 : index
    %c0_82 = arith.constant 0 : index
    %58 = vector.load %arg2[%c2_79, %c2_80, %c0_81, %c0_82] : memref<3x3x32x64xbf16, #tpu.memory_space<vmem>>, vector<1x1x32x64xbf16>
    %59 = vector.shape_cast %58 : vector<1x1x32x64xbf16> to vector<32x64xbf16>
    %cst_83 = arith.constant dense<0.000000e+00> : vector<32x64xf32>
    %60 = tpu.matmul %57, %59, %cst_83 {dimension_numbers = #tpu.dot_dimension_numbers<[1], [0], [0], [1], [0, 0, 1, 1], [], []>} : vector<32x32xbf16>, vector<32x64xbf16>, vector<32x64xf32> -> vector<32x64xf32>
    %61 = arith.addf %55, %60 : vector<32x64xf32>
    %c0_84 = arith.constant 0 : index
    %c0_85 = arith.constant 0 : index
    %62 = vector.load %arg5[%c0_84, %c0_85] : memref<1x64xf32, #tpu.memory_space<vmem>>, vector<1x64xf32>
    %63 = vector.broadcast %62 : vector<1x64xf32> to vector<32x64xf32>
    %64 = arith.addf %61, %63 : vector<32x64xf32>
    %cst_86 = arith.constant 0.000000e+00 : f32
    %65 = vector.broadcast %cst_86 : f32 to vector<32x64xf32>
    %66 = arith.maximumf %64, %65 : vector<32x64xf32>
    %67 = vector.shape_cast %66 : vector<32x64xf32> to vector<4x8x64xf32>
    %68 = arith.truncf %67 : vector<4x8x64xf32> to vector<4x8x64xbf16>
    %c1_87 = arith.constant 1 : index
    %c1_88 = arith.constant 1 : index
    %c0_89 = arith.constant 0 : index
    %69 = vector.load %arg9[%c1_87, %c1_88, %c0_89] : memref<6x10x64xbf16, #tpu.memory_space<vmem>>, vector<4x8x64xbf16>
    tpu.vector_store %arg9[%c1_87, %c1_88, %c0_89], %68 {strides = array<i32>} : memref<6x10x64xbf16, #tpu.memory_space<vmem>>, vector<4x8x64xbf16>,
    %70 = vector.shape_cast %5 : vector<4x8x32xbf16> to vector<32x32xbf16>
    %c0_90 = arith.constant 0 : index
    %c0_91 = arith.constant 0 : index
    %71 = vector.load %arg4[%c0_90, %c0_91] : memref<32x64xbf16, #tpu.memory_space<vmem>>, vector<32x64xbf16>
    %cst_92 = arith.constant dense<0.000000e+00> : vector<32x64xf32>
    %72 = tpu.matmul %70, %71, %cst_92 {dimension_numbers = #tpu.dot_dimension_numbers<[1], [0], [0], [1], [0, 0, 1, 1], [], []>} : vector<32x32xbf16>, vector<32x64xbf16>, vector<32x64xf32> -> vector<32x64xf32>
    %c0_93 = arith.constant 0 : index
    %c0_94 = arith.constant 0 : index
    %c0_95 = arith.constant 0 : index
    %73 = vector.load %arg9[%c0_93, %c0_94, %c0_95] : memref<6x10x64xbf16, #tpu.memory_space<vmem>>, vector<4x8x64xbf16>
    %74 = vector.shape_cast %73 : vector<4x8x64xbf16> to vector<32x64xbf16>
    %c0_96 = arith.constant 0 : index
    %c0_97 = arith.constant 0 : index
    %c0_98 = arith.constant 0 : index
    %c0_99 = arith.constant 0 : index
    %75 = vector.load %arg3[%c0_96, %c0_97, %c0_98, %c0_99] : memref<3x3x64x64xbf16, #tpu.memory_space<vmem>>, vector<1x1x64x64xbf16>
    %76 = vector.shape_cast %75 : vector<1x1x64x64xbf16> to vector<64x64xbf16>
    %cst_100 = arith.constant dense<0.000000e+00> : vector<32x64xf32>
    %77 = tpu.matmul %74, %76, %cst_100 {dimension_numbers = #tpu.dot_dimension_numbers<[1], [0], [0], [1], [0, 0, 1, 1], [], []>} : vector<32x64xbf16>, vector<64x64xbf16>, vector<32x64xf32> -> vector<32x64xf32>
    %78 = arith.addf %72, %77 : vector<32x64xf32>
    %c0_101 = arith.constant 0 : index
    %c1_102 = arith.constant 1 : index
    %c0_103 = arith.constant 0 : index
    %79 = vector.load %arg9[%c0_101, %c1_102, %c0_103] : memref<6x10x64xbf16, #tpu.memory_space<vmem>>, vector<4x8x64xbf16>
    %80 = vector.shape_cast %79 : vector<4x8x64xbf16> to vector<32x64xbf16>
    %c0_104 = arith.constant 0 : index
    %c1_105 = arith.constant 1 : index
    %c0_106 = arith.constant 0 : index
    %c0_107 = arith.constant 0 : index
    %81 = vector.load %arg3[%c0_104, %c1_105, %c0_106, %c0_107] : memref<3x3x64x64xbf16, #tpu.memory_space<vmem>>, vector<1x1x64x64xbf16>
    %82 = vector.shape_cast %81 : vector<1x1x64x64xbf16> to vector<64x64xbf16>
    %cst_108 = arith.constant dense<0.000000e+00> : vector<32x64xf32>
    %83 = tpu.matmul %80, %82, %cst_108 {dimension_numbers = #tpu.dot_dimension_numbers<[1], [0], [0], [1], [0, 0, 1, 1], [], []>} : vector<32x64xbf16>, vector<64x64xbf16>, vector<32x64xf32> -> vector<32x64xf32>
    %84 = arith.addf %78, %83 : vector<32x64xf32>
    %c0_109 = arith.constant 0 : index
    %c2_110 = arith.constant 2 : index
    %c0_111 = arith.constant 0 : index
    %85 = vector.load %arg9[%c0_109, %c2_110, %c0_111] : memref<6x10x64xbf16, #tpu.memory_space<vmem>>, vector<4x8x64xbf16>
    %86 = vector.shape_cast %85 : vector<4x8x64xbf16> to vector<32x64xbf16>
    %c0_112 = arith.constant 0 : index
    %c2_113 = arith.constant 2 : index
    %c0_114 = arith.constant 0 : index
    %c0_115 = arith.constant 0 : index
    %87 = vector.load %arg3[%c0_112, %c2_113, %c0_114, %c0_115] : memref<3x3x64x64xbf16, #tpu.memory_space<vmem>>, vector<1x1x64x64xbf16>
    %88 = vector.shape_cast %87 : vector<1x1x64x64xbf16> to vector<64x64xbf16>
    %cst_116 = arith.constant dense<0.000000e+00> : vector<32x64xf32>
    %89 = tpu.matmul %86, %88, %cst_116 {dimension_numbers = #tpu.dot_dimension_numbers<[1], [0], [0], [1], [0, 0, 1, 1], [], []>} : vector<32x64xbf16>, vector<64x64xbf16>, vector<32x64xf32> -> vector<32x64xf32>
    %90 = arith.addf %84, %89 : vector<32x64xf32>
    %c1_117 = arith.constant 1 : index
    %c0_118 = arith.constant 0 : index
    %c0_119 = arith.constant 0 : index
    %91 = vector.load %arg9[%c1_117, %c0_118, %c0_119] : memref<6x10x64xbf16, #tpu.memory_space<vmem>>, vector<4x8x64xbf16>
    %92 = vector.shape_cast %91 : vector<4x8x64xbf16> to vector<32x64xbf16>
    %c1_120 = arith.constant 1 : index
    %c0_121 = arith.constant 0 : index
    %c0_122 = arith.constant 0 : index
    %c0_123 = arith.constant 0 : index
    %93 = vector.load %arg3[%c1_120, %c0_121, %c0_122, %c0_123] : memref<3x3x64x64xbf16, #tpu.memory_space<vmem>>, vector<1x1x64x64xbf16>
    %94 = vector.shape_cast %93 : vector<1x1x64x64xbf16> to vector<64x64xbf16>
    %cst_124 = arith.constant dense<0.000000e+00> : vector<32x64xf32>
    %95 = tpu.matmul %92, %94, %cst_124 {dimension_numbers = #tpu.dot_dimension_numbers<[1], [0], [0], [1], [0, 0, 1, 1], [], []>} : vector<32x64xbf16>, vector<64x64xbf16>, vector<32x64xf32> -> vector<32x64xf32>
    %96 = arith.addf %90, %95 : vector<32x64xf32>
    %c1_125 = arith.constant 1 : index
    %c1_126 = arith.constant 1 : index
    %c0_127 = arith.constant 0 : index
    %97 = vector.load %arg9[%c1_125, %c1_126, %c0_127] : memref<6x10x64xbf16, #tpu.memory_space<vmem>>, vector<4x8x64xbf16>
    %98 = vector.shape_cast %97 : vector<4x8x64xbf16> to vector<32x64xbf16>
    %c1_128 = arith.constant 1 : index
    %c1_129 = arith.constant 1 : index
    %c0_130 = arith.constant 0 : index
    %c0_131 = arith.constant 0 : index
    %99 = vector.load %arg3[%c1_128, %c1_129, %c0_130, %c0_131] : memref<3x3x64x64xbf16, #tpu.memory_space<vmem>>, vector<1x1x64x64xbf16>
    %100 = vector.shape_cast %99 : vector<1x1x64x64xbf16> to vector<64x64xbf16>
    %cst_132 = arith.constant dense<0.000000e+00> : vector<32x64xf32>
    %101 = tpu.matmul %98, %100, %cst_132 {dimension_numbers = #tpu.dot_dimension_numbers<[1], [0], [0], [1], [0, 0, 1, 1], [], []>} : vector<32x64xbf16>, vector<64x64xbf16>, vector<32x64xf32> -> vector<32x64xf32>
    %102 = arith.addf %96, %101 : vector<32x64xf32>
    %c1_133 = arith.constant 1 : index
    %c2_134 = arith.constant 2 : index
    %c0_135 = arith.constant 0 : index
    %103 = vector.load %arg9[%c1_133, %c2_134, %c0_135] : memref<6x10x64xbf16, #tpu.memory_space<vmem>>, vector<4x8x64xbf16>
    %104 = vector.shape_cast %103 : vector<4x8x64xbf16> to vector<32x64xbf16>
    %c1_136 = arith.constant 1 : index
    %c2_137 = arith.constant 2 : index
    %c0_138 = arith.constant 0 : index
    %c0_139 = arith.constant 0 : index
    %105 = vector.load %arg3[%c1_136, %c2_137, %c0_138, %c0_139] : memref<3x3x64x64xbf16, #tpu.memory_space<vmem>>, vector<1x1x64x64xbf16>
    %106 = vector.shape_cast %105 : vector<1x1x64x64xbf16> to vector<64x64xbf16>
    %cst_140 = arith.constant dense<0.000000e+00> : vector<32x64xf32>
    %107 = tpu.matmul %104, %106, %cst_140 {dimension_numbers = #tpu.dot_dimension_numbers<[1], [0], [0], [1], [0, 0, 1, 1], [], []>} : vector<32x64xbf16>, vector<64x64xbf16>, vector<32x64xf32> -> vector<32x64xf32>
    %108 = arith.addf %102, %107 : vector<32x64xf32>
    %c2_141 = arith.constant 2 : index
    %c0_142 = arith.constant 0 : index
    %c0_143 = arith.constant 0 : index
    %109 = vector.load %arg9[%c2_141, %c0_142, %c0_143] : memref<6x10x64xbf16, #tpu.memory_space<vmem>>, vector<4x8x64xbf16>
    %110 = vector.shape_cast %109 : vector<4x8x64xbf16> to vector<32x64xbf16>
    %c2_144 = arith.constant 2 : index
    %c0_145 = arith.constant 0 : index
    %c0_146 = arith.constant 0 : index
    %c0_147 = arith.constant 0 : index
    %111 = vector.load %arg3[%c2_144, %c0_145, %c0_146, %c0_147] : memref<3x3x64x64xbf16, #tpu.memory_space<vmem>>, vector<1x1x64x64xbf16>
    %112 = vector.shape_cast %111 : vector<1x1x64x64xbf16> to vector<64x64xbf16>
    %cst_148 = arith.constant dense<0.000000e+00> : vector<32x64xf32>
    %113 = tpu.matmul %110, %112, %cst_148 {dimension_numbers = #tpu.dot_dimension_numbers<[1], [0], [0], [1], [0, 0, 1, 1], [], []>} : vector<32x64xbf16>, vector<64x64xbf16>, vector<32x64xf32> -> vector<32x64xf32>
    %114 = arith.addf %108, %113 : vector<32x64xf32>
    %c2_149 = arith.constant 2 : index
    %c1_150 = arith.constant 1 : index
    %c0_151 = arith.constant 0 : index
    %115 = vector.load %arg9[%c2_149, %c1_150, %c0_151] : memref<6x10x64xbf16, #tpu.memory_space<vmem>>, vector<4x8x64xbf16>
    %116 = vector.shape_cast %115 : vector<4x8x64xbf16> to vector<32x64xbf16>
    %c2_152 = arith.constant 2 : index
    %c1_153 = arith.constant 1 : index
    %c0_154 = arith.constant 0 : index
    %c0_155 = arith.constant 0 : index
    %117 = vector.load %arg3[%c2_152, %c1_153, %c0_154, %c0_155] : memref<3x3x64x64xbf16, #tpu.memory_space<vmem>>, vector<1x1x64x64xbf16>
    %118 = vector.shape_cast %117 : vector<1x1x64x64xbf16> to vector<64x64xbf16>
    %cst_156 = arith.constant dense<0.000000e+00> : vector<32x64xf32>
    %119 = tpu.matmul %116, %118, %cst_156 {dimension_numbers = #tpu.dot_dimension_numbers<[1], [0], [0], [1], [0, 0, 1, 1], [], []>} : vector<32x64xbf16>, vector<64x64xbf16>, vector<32x64xf32> -> vector<32x64xf32>
    %120 = arith.addf %114, %119 : vector<32x64xf32>
    %c2_157 = arith.constant 2 : index
    %c2_158 = arith.constant 2 : index
    %c0_159 = arith.constant 0 : index
    %121 = vector.load %arg9[%c2_157, %c2_158, %c0_159] : memref<6x10x64xbf16, #tpu.memory_space<vmem>>, vector<4x8x64xbf16>
    %122 = vector.shape_cast %121 : vector<4x8x64xbf16> to vector<32x64xbf16>
    %c2_160 = arith.constant 2 : index
    %c2_161 = arith.constant 2 : index
    %c0_162 = arith.constant 0 : index
    %c0_163 = arith.constant 0 : index
    %123 = vector.load %arg3[%c2_160, %c2_161, %c0_162, %c0_163] : memref<3x3x64x64xbf16, #tpu.memory_space<vmem>>, vector<1x1x64x64xbf16>
    %124 = vector.shape_cast %123 : vector<1x1x64x64xbf16> to vector<64x64xbf16>
    %cst_164 = arith.constant dense<0.000000e+00> : vector<32x64xf32>
    %125 = tpu.matmul %122, %124, %cst_164 {dimension_numbers = #tpu.dot_dimension_numbers<[1], [0], [0], [1], [0, 0, 1, 1], [], []>} : vector<32x64xbf16>, vector<64x64xbf16>, vector<32x64xf32> -> vector<32x64xf32>
    %126 = arith.addf %120, %125 : vector<32x64xf32>
    %c0_165 = arith.constant 0 : index
    %c0_166 = arith.constant 0 : index
    %127 = vector.load %arg6[%c0_165, %c0_166] : memref<1x64xf32, #tpu.memory_space<vmem>>, vector<1x64xf32>
    %128 = vector.broadcast %127 : vector<1x64xf32> to vector<32x64xf32>
    %129 = arith.addf %126, %128 : vector<32x64xf32>
    %cst_167 = arith.constant 0.000000e+00 : f32
    %130 = vector.broadcast %cst_167 : f32 to vector<32x64xf32>
    %131 = arith.maximumf %129, %130 : vector<32x64xf32>
    %132 = vector.shape_cast %131 : vector<32x64xf32> to vector<4x8x64xf32>
    %133 = arith.truncf %132 : vector<4x8x64xf32> to vector<4x8x64xbf16>
    %c0_168 = arith.constant 0 : index
    %c0_169 = arith.constant 0 : index
    %c0_170 = arith.constant 0 : index
    %c0_171 = arith.constant 0 : index
    %134 = vector.load %arg7[%c0_168, %c0_169, %c0_170, %c0_171] : memref<1x4x8x64xbf16, #tpu.memory_space<vmem>>, vector<1x4x8x64xbf16>
    %135 = vector.shape_cast %134 : vector<1x4x8x64xbf16> to vector<4x8x64xbf16>
    %136 = vector.shape_cast %133 : vector<4x8x64xbf16> to vector<1x4x8x64xbf16>
    tpu.vector_store %arg7[%c0_168, %c0_169, %c0_170, %c0_171], %136 {strides = array<i32>} : memref<1x4x8x64xbf16, #tpu.memory_space<vmem>>, vector<1x4x8x64xbf16>,
    return
  }
  func.func @transform_0(%arg0: i32) -> (i32, i32, i32, i32) {
    %c0_i32 = arith.constant 0 : i32
    %c0_i32_0 = arith.constant 0 : i32
    %c0_i32_1 = arith.constant 0 : i32
    %c0_i32_2 = arith.constant 0 : i32
    return %arg0, %c0_i32, %c0_i32_0, %c0_i32_1 : i32, i32, i32, i32
  }
  func.func @transform_1(%arg0: i32) -> (i32, i32, i32, i32) {
    %c0_i32 = arith.constant 0 : i32
    %c0_i32_0 = arith.constant 0 : i32
    %c0_i32_1 = arith.constant 0 : i32
    %c0_i32_2 = arith.constant 0 : i32
    %c0_i32_3 = arith.constant 0 : i32
    return %c0_i32, %c0_i32_0, %c0_i32_1, %c0_i32_2 : i32, i32, i32, i32
  }
  func.func @transform_2(%arg0: i32) -> (i32, i32, i32, i32) {
    %c0_i32 = arith.constant 0 : i32
    %c0_i32_0 = arith.constant 0 : i32
    %c0_i32_1 = arith.constant 0 : i32
    %c0_i32_2 = arith.constant 0 : i32
    %c0_i32_3 = arith.constant 0 : i32
    return %c0_i32, %c0_i32_0, %c0_i32_1, %c0_i32_2 : i32, i32, i32, i32
  }
  func.func @transform_3(%arg0: i32) -> (i32, i32) {
    %c0_i32 = arith.constant 0 : i32
    %c0_i32_0 = arith.constant 0 : i32
    %c0_i32_1 = arith.constant 0 : i32
    return %c0_i32, %c0_i32_0 : i32, i32
  }
  func.func @transform_4(%arg0: i32) -> (i32, i32) {
    %c0_i32 = arith.constant 0 : i32
    %c0_i32_0 = arith.constant 0 : i32
    %c0_i32_1 = arith.constant 0 : i32
    return %c0_i32, %c0_i32_0 : i32, i32
  }
  func.func @transform_5(%arg0: i32) -> (i32, i32) {
    %c0_i32 = arith.constant 0 : i32
    %c0_i32_0 = arith.constant 0 : i32
    %c0_i32_1 = arith.constant 0 : i32
    return %c0_i32, %c0_i32_0 : i32, i32
  }
  func.func @transform_6(%arg0: i32) -> (i32, i32, i32, i32) {
    %c0_i32 = arith.constant 0 : i32
    %c0_i32_0 = arith.constant 0 : i32
    %c0_i32_1 = arith.constant 0 : i32
    %c0_i32_2 = arith.constant 0 : i32
    return %arg0, %c0_i32, %c0_i32_0, %c0_i32_1 : i32, i32, i32, i32
  }
}

</mosaic_0001>

<bundles_post_ra>
// kernel: basic_block_forward.1
= control target key start
LH: loop header
LB: loop body
LE: loop exit
PB: predicated region body
PF: predicated region fallthrough
CT: control target
= control target key end

     0   :  { %11 = vsyncpa [#allocation5], 0  ;;  %s4675_s0 = inlined_call_operand.hbm [shape: bf16[2,4,8,32], index: 0, kind: input, shape index: {}]   ;;  %s4676_s1 = inlined_call_operand.hbm [shape: bf16[3,3,32,64], index: 1, kind: input, shape index: {}]   ;;  %s4677_s2 = inlined_call_operand.hbm [shape: bf16[3,3,64,64], index: 2, kind: input, shape index: {}]   ;;  %s4678_s3 = inlined_call_operand.hbm [shape: bf16[32,64], index: 3, kind: input, shape index: {}]   ;;  %s4679_s4 = inlined_call_operand.hbm [shape: f32[1,64], index: 4, kind: input, shape index: {}]   ;;  %s4680_s5 = inlined_call_operand.hbm [shape: f32[1,64], index: 5, kind: input, shape index: {}]   ;;  %s4681_s6 = inlined_call_operand.hbm [shape: bf16[2,4,8,64], index: 6, kind: output, shape index: {}]  }
   0x1   :  { %13 = vsyncpa [#allocation5 + $0x1], 0 }
   0x2   :  { %14 = vsyncpa [#allocation8], 0 }
   0x3   :  { %15 = vsyncpa [#allocation11], 0 }
   0x4   :  { %16 = vsyncpa [#allocation14], 0 }
   0x5   :  { %17 = vsyncpa [#allocation6], 0 }
   0x6   :  { %19 = vsyncpa [#allocation6 + $0x1], 0  ;;  %s4006_s21 = smov 0   ;;  %s4008_s22 = smov 0  }
   0x7   :  { %s4010_s23 = smov 0   ;;  %s4012_s24 = smov 0  }
   0x8 LB: > { %s3959_s25 = smov [#allocation7]   ;;  %s4027_s27 = sadd.s32 4294967295, %s3957_s24   ;;  %s3957_s24 = sphi %s4012_s24, %s4718_s24   ;;  %s3953_s23 = sphi %s4010_s23, %s4717_s23   ;;  %s3949_s22 = sphi %s4008_s22, %s4716_s22   ;;  %s3945_s21 = sphi %s4006_s21, %s4715_s21  }
   0x9   : > { %s199_s26 = sshll.u32 %s3959_s25, 4  ;;  %p2995_p0 = scmp.ge.s32.totalorder %s3957_s24, 1  ;;  %s4032_s26 = int_to_ptr.vmem [resolvable:$true] %s199_s26 }
   0xa   : > { %p4682_p1 = scmp.eq.s32.totalorder %s4027_s27, 0  ;;  %p187_p2 = scmp.lt.s32.totalorder %s3957_s24, 3 }
   0xb   : > { %s3960_s29 = smov [#allocation10]   ;;  %s3961_s8 = smov [#allocation9]  }
   0xc   : > { %p4034_p3 = pnand %p2995_p0, %p187_p2  ;;  %s225_s30 = sshll.u32 %s3960_s29, 4  ;;  %s4047_s30 = int_to_ptr.vmem [resolvable:$true] %s225_s30 }
   0xd   : > { %s212_s9 = sshll.u32 %s3961_s8, 4  ;;  %s3709_s12 = scalar_lea.hbm %s4676_s1, 2304  ;;  %s4049_s9 = int_to_ptr.vmem [resolvable:$true] %s212_s9 }
   0xe   : > { %s4685_s28 = scalar_select %p4034_p3, 1, 0 }
   0xf   : > { %p3560_p5 = pneg %p4034_p3  ;;  %p3710_p7 = scmp.ne.s32.totalorder %s4676_s1, %s3709_s12 }
  0x10   : > { %p3716_p11 = scmp.lt.u32.totalorder %s3709_s12, %s4676_s1 }
  0x11   : > { %p4043_p6 = pnand %p3560_p5, %p4682_p1 }
  0x13   : > { %p4059_p8 = pneg %p4043_p6 }
  0x15   : > { %p3712_p9 = pnand %p4059_p8, %p3710_p7 }
  0x17   : > { %p3713_p10 = pneg %p3712_p9 }
  0x19   : > { %p3718_p12 = pnand %p3716_p11, %p3713_p10 }
  0x1b   : > { %3721 = shalt.err (!%p3718_p12)
}
  0x1c   : > { %s3722_s18 = scalar_lea.vmem %s4032_s26, 2304  ;;  %p3730_p5 = scmp.lt.s32.totalorder %s4032_s26, %s4032_s26 }
  0x1d   : > { %p3723_p13 = scmp.ne.s32.totalorder %s4032_s26, %s3722_s18  ;;  %p3731_p4 = scmp.lt.s32.totalorder %s3722_s18, %s3722_s18 }
  0x1f   : > { %p3725_p0 = pnand %p3723_p13, %p4059_p8  ;;  %p3732_p7 = por %p3731_p4, %p3730_p5 }
  0x21   : > { %p3726_p2 = pneg %p3725_p0 }
  0x23   : > { %p3733_p9 = pnand %p3732_p7, %p3726_p2 }
  0x25   : > { %3736 = shalt.err (!%p3733_p9)
}
  0x26   : > { %s3962_s19 = smov 64   ;;  %s3963_s20 = smov 4  }
  0x27   : > { %3563 = dma.hbm_to_vmem [thread:$0]  (!%p4043_p6), %s4676_s1, 2304, %s4032_s26, [#allocation8], %s3962_s19, %s3962_s19, %s3963_s20  }
  0x28   : > { %s3737_s11 = scalar_lea.hbm %s4678_s3, 256 }
  0x29   : > { %p3738_p4 = scmp.ne.s32.totalorder %s4678_s3, %s3737_s11  ;;  %p3744_p12 = scmp.lt.u32.totalorder %s3737_s11, %s4678_s3 }
  0x2b   : > { %p3740_p10 = pnand %p3738_p4, %p4059_p8 }
  0x2d   : > { %p3741_p11 = pneg %p3740_p10 }
  0x2f   : > { %p3746_p13 = pnand %p3744_p12, %p3741_p11 }
  0x31   : > { %3749 = shalt.err (!%p3746_p13)
}
  0x32   : > { %s3750_s26 = scalar_lea.vmem %s4047_s30, 256  ;;  %p3758_p7 = scmp.lt.s32.totalorder %s4047_s30, %s4047_s30 }
  0x33   : > { %p3751_p0 = scmp.ne.s32.totalorder %s4047_s30, %s3750_s26  ;;  %p3759_p9 = scmp.lt.s32.totalorder %s3750_s26, %s3750_s26 }
  0x35   : > { %p3753_p2 = pnand %p3751_p0, %p4059_p8  ;;  %p3760_p4 = por %p3759_p9, %p3758_p7 }
  0x37   : > { %p3754_p5 = pneg %p3753_p2 }
  0x39   : > { %p3761_p10 = pnand %p3760_p4, %p3754_p5 }
  0x3b   : > { %3764 = shalt.err (!%p3761_p10)
}
  0x3c   : > { %3569 = dma.hbm_to_vmem [thread:$0]  (!%p4043_p6), %s4678_s3, 256, %s4047_s30, [#allocation11], %s3962_s19, %s3962_s19, %s3963_s20  }
  0x3d   : > { %s3765_s8 = scalar_lea.hbm %s4677_s2, 4608 }
  0x3e   : > { %p3766_p11 = scmp.ne.s32.totalorder %s4677_s2, %s3765_s8  ;;  %p3772_p0 = scmp.lt.u32.totalorder %s3765_s8, %s4677_s2 }
  0x40   : > { %p3768_p12 = pnand %p3766_p11, %p4059_p8 }
  0x42   : > { %p3769_p13 = pneg %p3768_p12 }
  0x44   : > { %p3774_p2 = pnand %p3772_p0, %p3769_p13 }
  0x46   : > { %3777 = shalt.err (!%p3774_p2)
}
  0x47   : > { %s3778_s30 = scalar_lea.vmem %s4049_s9, 4608  ;;  %p3786_p4 = scmp.lt.s32.totalorder %s4049_s9, %s4049_s9 }
  0x48   : > { %p3779_p5 = scmp.ne.s32.totalorder %s4049_s9, %s3778_s30  ;;  %p3787_p10 = scmp.lt.s32.totalorder %s3778_s30, %s3778_s30 }
  0x4a   : > { %p3781_p7 = pnand %p3779_p5, %p4059_p8  ;;  %p3788_p11 = por %p3787_p10, %p3786_p4 }
  0x4c   : > { %p3782_p9 = pneg %p3781_p7 }
  0x4e   : > { %p3789_p12 = pnand %p3788_p11, %p3782_p9 }
  0x50   : > { %3792 = shalt.err (!%p3789_p12)
}
  0x51   : > { %3566 = dma.hbm_to_vmem [thread:$0]  (!%p4043_p6), %s4677_s2, 4608, %s4049_s9, [#allocation8], %s3962_s19, %s3962_s19, %s3963_s20  }
  0x52   : > { %s3964_s26 = smov [#allocation12]   ;;  %s3965_s18 = smov [#allocation13]  }
  0x53   : > { %s239_s17 = sshll.u32 %s3964_s26, 4  ;;  %s250_s25 = sshll.u32 %s3965_s18, 4  ;;  %s240_s17 = int_to_ptr.vmem [resolvable:$true] %s239_s17  ;;  %s251_s25 = int_to_ptr.vmem [resolvable:$true] %s250_s25 }
  0x54   : > { %s3793_s10 = scalar_lea.hbm %s4679_s4, 16 }
  0x55   : > { %p3794_p13 = scmp.ne.s32.totalorder %s4679_s4, %s3793_s10  ;;  %p3800_p5 = scmp.lt.u32.totalorder %s3793_s10, %s4679_s4 }
  0x57   : > { %p3796_p0 = pnand %p3794_p13, %p4059_p8 }
  0x59   : > { %p3797_p2 = pneg %p3796_p0 }
  0x5b   : > { %p3802_p7 = pnand %p3800_p5, %p3797_p2 }
  0x5d   : > { %3805 = shalt.err (!%p3802_p7)
}
  0x5e   : > { %s3806_s9 = scalar_lea.vmem %s240_s17, 16  ;;  %s3813_s14 = scalar_lea.vmem %s240_s17, 32 }
  0x5f   : > { %p3807_p9 = scmp.ne.s32.totalorder %s240_s17, %s3806_s9  ;;  %p3814_p11 = scmp.lt.s32.totalorder %s240_s17, %s240_s17 }
  0x60   : > { %p3815_p12 = scmp.lt.s32.totalorder %s3813_s14, %s3806_s9 }
  0x61   : > { %p3809_p4 = pnand %p3807_p9, %p4059_p8 }
  0x62   : > { %p3816_p1 = por %p3815_p12, %p3814_p11 }
  0x63   : > { %p3810_p10 = pneg %p3809_p4 }
  0x65   : > { %p3817_p3 = pnand %p3816_p1, %p3810_p10 }
  0x67   : > { %3820 = shalt.err (!%p3817_p3)
}
  0x68   : > { %3572 = dma.hbm_to_vmem [thread:$0]  (!%p4043_p6), %s4679_s4, 16, %s240_s17, [#allocation11]  }
  0x69   : > { %s3821_s8 = scalar_lea.hbm %s4680_s5, 16 }
  0x6a   : > { %p3822_p13 = scmp.ne.s32.totalorder %s4680_s5, %s3821_s8  ;;  %p3828_p3 = scmp.lt.u32.totalorder %s3821_s8, %s4680_s5 }
  0x6c   : > { %p3824_p0 = pnand %p3822_p13, %p4059_p8 }
  0x6e   : > { %p3825_p1 = pneg %p3824_p0 }
  0x70   : > { %p3830_p2 = pnand %p3828_p3, %p3825_p1 }
  0x72   : > { %3833 = shalt.err (!%p3830_p2)
}
  0x73   : > { %s3834_s30 = scalar_lea.vmem %s251_s25, 16  ;;  %s3841_s17 = scalar_lea.vmem %s251_s25, 32 }
  0x74   : > { %p3835_p5 = scmp.ne.s32.totalorder %s251_s25, %s3834_s30  ;;  %p3842_p4 = scmp.lt.s32.totalorder %s251_s25, %s251_s25 }
  0x75   : > { %p3843_p10 = scmp.lt.s32.totalorder %s3841_s17, %s3834_s30 }
  0x76   : > { %p3837_p7 = pnand %p3835_p5, %p4059_p8 }
  0x77   : > { %p3844_p11 = por %p3843_p10, %p3842_p4 }
  0x78   : > { %p3838_p9 = pneg %p3837_p7 }
  0x7a   : > { %p3845_p12 = pnand %p3844_p11, %p3838_p9 }
  0x7c   : > { %3848 = shalt.err (!%p3845_p12)
}
  0x7d   : > { %3575 = dma.hbm_to_vmem [thread:$0]  (!%p4043_p6), %s4680_s5, 16, %s251_s25, [#allocation14]  }
  0x7e   : > { %s2994_s15 = sadd.s32 4294967294, %s3957_s24   ;;  %s4173_s7 = sadd.s32 1, %s3957_s24  }
  0x7f   : > { %s32_s16 = sadd.s32 1, %s3953_s23  ;;  %s29_s26 = ssub.s32 %s3957_s24, %s4173_s7 }
  0x80   : > { %p39_p8 = scmp.ne.s32.totalorder %s3953_s23, %s3949_s22  ;;  %p30_p13 = scmp.eq.s32.totalorder %s29_s26, 0 }
  0x81   : > { %p40_p0 = scmp.eq.s32.totalorder %s3957_s24, 0  ;;  %p45_p1 = scmp.ne.s32.totalorder %s3949_s22, %s3945_s21 }
  0x82   : > { %p174_p3 = scmp.eq.s32.totalorder %s4027_s27, 1  ;;  %p4688_p5 = scmp.eq.s32.totalorder %s4027_s27, 0 }
  0x83   : > { %s4185_s18 = scalar_select %p30_p13, %s3953_s23, %s32_s16  }
  0x84   : > { %p41_p2 = por %p40_p0, %p39_p8  ;;  %p4189_p7 = por %p4688_p5, %p45_p1 }
  0x85   : > { %p4193_p6 = por %p174_p3, %p39_p8  ;;  %p180_p9 = scmp.eq.s32.totalorder %s2994_s15, 1 }
  0x86   : > { %p3589_p4 = scmp.lt.s32.totalorder %s3957_s24, 2  ;;  %s261_s8 = sand.u32 1, %s3953_s23  }
  0x87   : > { %s4690_s25 = scalar_select %p4193_p6, 1, 0 }
  0x88   : > { %p4199_p10 = por %p180_p9, %p45_p1  ;;  %s3002_s11 = sshll.u32 %s261_s8, 4 }
  0x89   : > { %s3180_s12 = sshll.u32 %s3957_s24, 8  ;;  %s265_s9 = scalar_lea.vmem [#allocation4], %s3002_s11 }
  0x8a   : > { %s4691_s10 = scalar_select %p4199_p10, 1, 0 }
  0x8b   : > { %s4207_s17 = scalar_lea.hbm %s4675_s0, %s3180_s12  ;;  %s272_s14 = sshll.u32 %s265_s9, 4  ;;  %s4213_s14 = int_to_ptr.vmem [resolvable:$true] %s272_s14 }
  0x8c   : > { %p4209_p11 = pnand %p3589_p4, %p41_p2  ;;  %s4215_s16 = scalar_lea.sflag [#allocation5], %s261_s8 }
  0x8d   : > { %s3849_s26 = scalar_lea.hbm %s4207_s17, 256  ;;  %s3854_s13 = scalar_lea.hbm %s4675_s0, 512 }
  0x8e   : > { %p3850_p12 = scmp.ne.s32.totalorder %s4207_s17, %s3849_s26  ;;  %p3851_p8 = pneg %p4209_p11 }
  0x8f   : > { %p3855_p1 = scmp.lt.u32.totalorder %s4207_s17, %s4675_s0  ;;  %p3856_p3 = scmp.lt.u32.totalorder %s3854_s13, %s3849_s26 }
  0x90   : > { %p3852_p13 = pnand %p3851_p8, %p3850_p12  ;;  %p3858_p5 = scmp.lt.u32.totalorder %s3849_s26, %s4207_s17 }
  0x91   : > { %p3857_p2 = por %p3856_p3, %p3855_p1 }
  0x92   : > { %p3853_p0 = pneg %p3852_p13 }
  0x93   : > { %p3859_p9 = por %p3858_p5, %p3857_p2 }
  0x95   : > { %p3860_p4 = pnand %p3859_p9, %p3853_p0 }
  0x97   : > { %3863 = shalt.err (!%p3860_p4)
}
  0x98   : > { %s3864_s8 = scalar_lea.vmem %s4213_s14, 256  ;;  %s3966_s11 = smov [#allocation4]  }
  0x99   : > { %p3865_p12 = scmp.ne.s32.totalorder %s4213_s14, %s3864_s8  ;;  %s3869_s12 = sshll.u32 %s3966_s11, 4  ;;  %s3870_s12 = int_to_ptr.vmem [resolvable:$false] %s3869_s12 }
  0x9a   : > { %s3871_s30 = scalar_lea.vmem %s3870_s12, 512  ;;  %p3872_p6 = scmp.lt.s32.totalorder %s4213_s14, %s3870_s12 }
  0x9b   : > { %p3867_p13 = pnand %p3865_p12, %p3851_p8  ;;  %p3873_p1 = scmp.lt.s32.totalorder %s3871_s30, %s3864_s8 }
  0x9d   : > { %p3868_p10 = pneg %p3867_p13  ;;  %p3874_p3 = por %p3873_p1, %p3872_p6 }
  0x9f   : > { %p3875_p2 = pnand %p3874_p3, %p3868_p10 }
  0xa1   : > { %3878 = shalt.err (!%p3875_p2)
}
  0xa2   : > { %3579 = dma.hbm_to_vmem [thread:$0]  (!%p4209_p11), %s4207_s17, 256, %s4213_s14, %s4215_s16, %s3962_s19, %s3962_s19, %s3963_s20  }
  0xa3   : > { %p4693_p8 = scmp.ne.s32.totalorder %s4685_s28, 0 }
  0xa4   : > { %s4249_s26 = sand.u32 (!%p4693_p8), 1, %s3949_s22  }
  0xa5   : > { %284 = sbr.rel (%p4693_p8) target bundleno = 892 (0x37c), region = 44  ;;  %s3006_s13 = sshll.u32 (!%p4693_p8), %s4249_s26, 4 }
  0xa6   : > { %s287_s9 = scalar_lea.sflag (!%p4693_p8), [#allocation5], %s4249_s26  ;;  %s4255_s15 = scalar_lea.vmem (!%p4693_p8), [#allocation4], %s3006_s13 }
  0xac   : > { %3924 = dma.done.wait (%p4189_p7), %s287_s9, 256  }
  0xad   : > { %3926 = vsyncadd (%p4189_p7), %s287_s9, 4294967040  ;;  %p4694_p6 = scmp.eq.s32.totalorder %s4027_s27, 0 }
  0xaf   : > { %3928 = dma.done.wait (%p4694_p6), [#allocation8], 6912   ;;  %p4695_p10 = pmov %p4694_p6 }
  0xb0   : > { %p4696_p11 = pmov %p4694_p6 }
  0xb1   : > { %3930 = vsyncadd (%p4695_p10), [#allocation8], 4294960384 }
  0xb2   : > { %3932 = dma.done.wait (%p4696_p11), [#allocation11], 272   ;;  %p4697_p0 = pmov %p4694_p6 }
  0xb4   : > { %3934 = vsyncadd (%p4697_p0), [#allocation11], 4294967024  ;;  %p4698_p5 = pmov %p4697_p0 }
  0xb5   : > { %p4699_p9 = pmov %p4697_p0 }
  0xb6   : > { %3936 = dma.done.wait (%p4698_p5), [#allocation14], 16  }
  0xb7   : > { %3938 = vsyncadd (%p4699_p9), [#allocation14], 4294967280  ;;  %vm340_vm0 = vcmask 257024   ;;  %vm342_vm1 = vcmask 253952   ;;  %v3967_v0 = vmov 0   ;;  %v3638_v1 = vld [vmem:[#allocation7 + $0x10] sm:$0xff]  }
  0xb8   : > { %341 = vst.msk [vmem:[#allocation2] sm:$0xf] %vm340_vm0, %v3967_v0  ;;  %344 = vst.msk [vmem:[#allocation2 + $0x8] sm:$0xf] %vm340_vm0, %v3967_v0  ;;  %vm414_vm2 = vsmask.f32 7938  ;;  %3280 = vmatprep.subr.bf16.mxu0 %v3638_v1 }
  0xb9   : > { %343 = vst.msk [vmem:[#allocation2 + $0x4] sm:$0x1] %vm342_vm1, %v3967_v0  ;;  %345 = vst.msk [vmem:[#allocation2 + $0xc] sm:$0x1] %vm342_vm1, %v3967_v0  ;;  %v3639_v2 = vld [vmem:[#allocation7 + $0x18] sm:$0xff]   ;;  %3281 = vmatpush3.bf16.msra.mxu0 %v3638_v1  ;;  %v4310_v12 = vld [vmem:[#allocation7] sm:$0xff]  }
  0xba   : > { %351 = vst.msk [vmem:[#allocation2 + $0x24] sm:$0x1] %vm342_vm1, %v3967_v0  ;;  %347 = vst.msk [vmem:[#allocation2 + $0x14] sm:$0x1] %vm342_vm1, %v3967_v0  ;;  %v368_v3 = vld [vmem:[%s4255_s15] sm:$0xf]  ;;  %3282 = vmatprep.subr.bf16.mxu0 %v3639_v2 }
  0xbb   : > { %346 = vst.msk [vmem:[#allocation2 + $0x10] sm:$0xf] %vm340_vm0, %v3967_v0  ;;  %348 = vst.msk [vmem:[#allocation2 + $0x18] sm:$0xf] %vm340_vm0, %v3967_v0  ;;  %v4299_v4 = vld [vmem:[%s4255_s15 + $0xc] sm:$0xf] }
  0xbc   : > { %349 = vst.msk [vmem:[#allocation2 + $0x1c] sm:$0x1] %vm342_vm1, %v3967_v0  ;;  %353 = vst.msk [vmem:[#allocation2 + $0x2c] sm:$0x1] %vm342_vm1, %v3967_v0  ;;  %vm420_vm3 = vsmask.f32 256 }
  0xbd   : > { %350 = vst.msk [vmem:[#allocation2 + $0x20] sm:$0xf] %vm340_vm0, %v3967_v0  ;;  %352 = vst.msk [vmem:[#allocation2 + $0x28] sm:$0xf] %vm340_vm0, %v3967_v0  ;;  %v373_v5 = vshrl.u32 %v368_v3, 16  ;;  %v376_v6 = vshll.u32 %v368_v3, 16  ;;  %3283 = vmatpush3.bf16.msra.mxu0 %v3639_v2 }
  0xbe   : > { %v397_v7 = vshrl.u32 %v4299_v4, 16  ;;  %vm4304_vm4 = vmand %vm340_vm0, %vm414_vm2  ;;  %v369_v18 = vld [vmem:[%s4255_s15 + $0x4] sm:$0xf]  ;;  %v370_v23 = vld [vmem:[%s4255_s15 + $0x8] sm:$0xf]  ;;  %3288 = vmatprep.subr.bf16.mxu0 %v4310_v12  ;;  %v400_v50 = vshll.u32 %v4299_v4, 16 }
  0xbf   : > { %v416_v9 = vld [vmem:[#allocation2 + $0x8] sm:$0xf]  ;;  %v4308_v11 = vld [vmem:[#allocation2] sm:$0xf]  ;;  %v375_v13 = vrot.slane %v373_v5, 7  ;;  %vm4314_vm5 = vmand %vm342_vm1, %vm420_vm3  ;;  %v381_v25 = vshrl.u32 %v369_v18, 16 }
  0xc0   : > { %v422_v10 = vld [vmem:[#allocation2 + $0xc] sm:$0x1]  ;;  %v399_v14 = vrot.slane %v397_v7, 7  ;;  %v459_v16 = vshrl.u32 %v4308_v11, 16  ;;  %v462_v22 = vshll.u32 %v4308_v11, 16  ;;  %v384_v26 = vshll.u32 %v369_v18, 16 }
  0xc1   : > { %v440_v17 = vld [vmem:[#allocation2 + $0x24] sm:$0x1]  ;;  %v378_v19 = vor.u32 %v376_v6, %v375_v13  ;;  %v379_v20 = vrot.slane %v375_v13, 4  ;;  %v389_v31 = vshrl.u32 %v370_v23, 16  ;;  %v428_v33 = vld [vmem:[#allocation2 + $0x14] sm:$0x1] }
  0xc2   : > { %v403_v21 = vrot.slane %v399_v14, 4  ;;  %v461_v24 = vrot.slane %v459_v16, 4  ;;  %v4329_v30 = vld [vmem:[#allocation2 + $0x4] sm:$0x1]  ;;  %v425_v32 = vld [vmem:[#allocation2 + $0x10] sm:$0xf]  ;;  %v402_v59 = vor.u32 %v400_v50, %v399_v14 }
  0xc3   : > { %v417_v27 = vsel %vm4304_vm4, %v378_v19, %v416_v9  ;;  %v423_v28 = vsel %vm4314_vm5, %v379_v20, %v422_v10  ;;  %v383_v34 = vrot.slane %v381_v25, 7  ;;  %v392_v35 = vshll.u32 %v370_v23, 16  ;;  %v431_v36 = vld [vmem:[#allocation2 + $0x18] sm:$0xf]  ;;  %v434_v37 = vld [vmem:[#allocation2 + $0x1c] sm:$0x1] }
  0xc4   : > { %v441_v29 = vsel %vm4314_vm5, %v403_v21, %v440_v17  ;;  %418 = vst [vmem:[#allocation2 + $0x8] sm:$0xf] %v417_v27  ;;  %424 = vst [vmem:[#allocation2 + $0xc] sm:$0x1] %v423_v28  ;;  %v464_v38 = vrot.slane %v462_v22, 5  ;;  %v391_v39 = vrot.slane %v389_v31, 7 }
  0xc5   : > { %442 = vst [vmem:[#allocation2 + $0x24] sm:$0x1] %v441_v29  ;;  %v386_v40 = vor.u32 %v384_v26, %v383_v34  ;;  %v387_v41 = vrot.slane %v383_v34, 4  ;;  %vm455_vm6 = vsmask.f32 3328  ;;  %v468_v44 = vshll.u32 %v4329_v30, 16 }
  0xc6   : > { %v394_v42 = vor.u32 %v392_v35, %v391_v39  ;;  %v395_v43 = vrot.slane %v391_v39, 4  ;;  %v465_v47 = vor.u32 %v464_v38, %v461_v24  ;;  %vm456_vm7 = vsmask.f32 7440  ;;  %v437_v53 = vld [vmem:[#allocation2 + $0x20] sm:$0xf]  ;;  %v3641_v34 = vld [vmem:[#allocation7 + $0x8] sm:$0xff]  }
  0xc7   : > { %v426_v45 = vsel %vm4304_vm4, %v386_v40, %v425_v32  ;;  %v429_v46 = vsel %vm4314_vm5, %v387_v41, %v428_v33  ;;  %v470_v58 = vrot.slane %v468_v44, 5  ;;  %vm4345_vm8 = vmor %vm455_vm6, %vm456_vm7  ;;  %v438_v63 = vsel %vm4304_vm4, %v402_v59, %v437_v53  ;;  %v670_v35 = vld [vmem:[#allocation2] sm:$0xe]  ;;  %v3644_v53 = vld [vmem:[#allocation7 + $0x28] sm:$0xff]   ;;  %s338_s28 = scalar_lea.vmem [#allocation15], %s3006_s13  ;;  %s3185_s20 = sshll.u32 %s4027_s27, 8 }
  0xc8   : > { %427 = vst [vmem:[#allocation2 + $0x10] sm:$0xf] %v426_v45  ;;  %430 = vst [vmem:[#allocation2 + $0x14] sm:$0x1] %v429_v46  ;;  %v432_v48 = vsel %vm4304_vm4, %v394_v42, %v431_v36  ;;  %v435_v49 = vsel %vm4314_vm5, %v395_v43, %v434_v37  ;;  %v466_v57 = vrot.slane %v465_v47, 4  ;;  %vm537_vm9 = vcmask 261120   ;;  %s4628_s14 = scalar_lea.hbm %s4681_s6, %s3185_s20 }
  0xc9   : > { %433 = vst [vmem:[#allocation2 + $0x18] sm:$0xf] %v432_v48  ;;  %436 = vst [vmem:[#allocation2 + $0x1c] sm:$0x1] %v435_v49  ;;  %vm682_vm10 = vcmask 1042432   ;;  %vm683_vm11 = vcmask 1046532  }
  0xca   : > { %439 = vst [vmem:[#allocation2 + $0x20] sm:$0xf] %v438_v63  ;;  %v471_v5 = vsel %vm4345_vm8, %v466_v57, %v470_v58  ;;  %v687_v37 = vrot.slane %v4329_v30, 5  ;;  %v3642_v39 = vld [vmem:[#allocation7 + $0x20] sm:$0xff]   ;;  %v3025_v40 = vrot.slane %v670_v35, 9  ;;  %vm4380_vm12 = vmor %vm682_vm10, %vm683_vm11  ;;  %vm354_vm13 = vcmask 519168  }
  0xcb   : > { %v444_v51 = vld [vmem:[#allocation2 + $0x8] sm:$0xf]  ;;  %v4341_v52 = vld [vmem:[#allocation2 + $0xc] sm:$0x1]  ;;  %vm356_vm14 = vcmask 516096   ;;  %vm4491_vm15 = vmand %vm354_vm13, %vm414_vm2  ;;  %vm1626_vm1 = vcmask 523264  }
  0xcc   : > { %v473_v54 = vshrl.u32 %v444_v51, 16  ;;  %v476_v55 = vshll.u32 %v444_v51, 16  ;;  %v482_v56 = vshll.u32 %v4341_v52, 16  ;;  %v3019_v32 = vcombine.low %v4308_v11, %v444_v51  ;;  %v671_v36 = vld [vmem:[#allocation2 + $0x8] sm:$0xe]  ;;  %vm4497_vm0 = vmand %vm356_vm14, %vm420_vm3  ;;  %s2873_s19 = sshll.u32 %s338_s28, 4  ;;  %s4622_s19 = int_to_ptr.vmem [resolvable:$true] %s2873_s19 }
  0xcd   : > { %v691_v38 = vrot.slane %v4341_v52, 5  ;;  %v3026_v11 = vrot.slane %v671_v36, 9  ;;  %v873_v42 = vld [vmem:[#allocation2 + $0x8] sm:$0xf]  ;;  %362 = vst.msk [vmem:[#allocation3 + $0x18] sm:$0xf] %vm354_vm13, %v3967_v0 }
  0xce   : > { %v475_v61 = vrot.slane %v473_v54, 4  ;;  %v478_v62 = vrot.slane %v476_v55, 5  ;;  %v484_v2 = vrot.slane %v482_v56, 5  ;;  %v882_v44 = vshrl.u32 %v873_v42, 16  ;;  %355 = vst.msk [vmem:[#allocation3] sm:$0xf] %vm354_vm13, %v3967_v0 }
  0xcf   : > { %v4351_v3 = vld [vmem:[#allocation2 + $0x10] sm:$0xf]  ;;  %v4353_v4 = vld [vmem:[#allocation2 + $0x14] sm:$0x1]  ;;  %v692_v43 = vsel %vm4380_vm12, %v3026_v11, %v691_v38  ;;  %v885_v45 = vshll.u32 %v873_v42, 16  ;;  %s2860_s27 = scalar_lea.sflag [#allocation6], %s4249_s26 }
  0xd0   : > { %v479_v1 = vor.u32 %v478_v62, %v475_v61  ;;  %v4357_v6 = vld [vmem:[#allocation2 + $0x18] sm:$0xf]  ;;  %v4359_v7 = vld [vmem:[#allocation2 + $0x1c] sm:$0x1]  ;;  %v487_v9 = vshrl.u32 %v4351_v3, 16  ;;  %v490_v10 = vshll.u32 %v4351_v3, 16 }
  0xd1   : > { %v496_v13 = vshll.u32 %v4353_v4, 16  ;;  %v501_v14 = vshrl.u32 %v4357_v6, 16  ;;  %v504_v15 = vshll.u32 %v4357_v6, 16  ;;  %v510_v18 = vshll.u32 %v4359_v7, 16  ;;  %v875_v30 = vld [vmem:[#allocation2 + $0x10] sm:$0xf] }
  0xd2   : > { %v480_v8 = vrot.slane %v479_v1, 4  ;;  %v489_v16 = vrot.slane %v487_v9, 4  ;;  %v492_v17 = vrot.slane %v490_v10, 5  ;;  %v672_v46 = vld [vmem:[#allocation2 + $0x10] sm:$0xe]  ;;  %v3020_v47 = vcombine.low %v4351_v3, %v4357_v6  ;;  %s3879_s16 = scalar_lea.vmem %s4622_s19, 256 }
  0xd3   : > { %v503_v20 = vrot.slane %v501_v14, 4  ;;  %v506_v21 = vrot.slane %v504_v15, 5  ;;  %v498_v24 = vrot.slane %v496_v13, 5  ;;  %v512_v26 = vrot.slane %v510_v18, 5  ;;  %v877_v48 = vld [vmem:[#allocation2 + $0x18] sm:$0xf]  ;;  %p3880_p7 = scmp.ne.s32.totalorder %s4622_s19, %s3879_s16 }
  0xd4   : > { %v485_v19 = vsel %vm4345_vm8, %v480_v8, %v484_v2  ;;  %v493_v23 = vor.u32 %v492_v17, %v489_v16  ;;  %v896_v50 = vshrl.u32 %v875_v30, 16  ;;  %v899_v51 = vshll.u32 %v875_v30, 16  ;;  %v879_v52 = vld [vmem:[#allocation2 + $0x20] sm:$0xf]  ;;  %v673_v54 = vld [vmem:[#allocation2 + $0x18] sm:$0xe] }
  0xd5   : > { %v3013_v22 = vcombine.low %v471_v5, %v485_v19  ;;  %v507_v25 = vor.u32 %v506_v21, %v503_v20  ;;  %v695_v55 = vrot.slane %v4353_v4, 5  ;;  %v3027_v56 = vrot.slane %v672_v46, 9  ;;  %v4394_v3 = vld [vmem:[#allocation2 + $0xc] sm:$0x1]  ;;  %v3645_v4 = vld [vmem:[#allocation7 + $0x30] sm:$0xff]   ;;  %p4712_p4 = scmp.ne.s32.totalorder %s4690_s25, 0 }
  0xd6   : > { %v494_v27 = vrot.slane %v493_v23, 4  ;;  %v910_v57 = vshrl.u32 %v877_v48, 16  ;;  %v913_v58 = vshll.u32 %v877_v48, 16  ;;  %v884_v59 = vrot.slane %v882_v44, 4  ;;  %v4396_v9 = vld [vmem:[#allocation2 + $0x14] sm:$0x1] }
  0xd7   : > { %3284 = vmatprep.mubr.msk.bf16.mxu0 %vm537_vm9, %v3013_v22  ;;  %v508_v28 = vrot.slane %v507_v25, 4  ;;  %v887_v61 = vrot.slane %v885_v45, 5  ;;  %v924_v62 = vshrl.u32 %v879_v52, 16  ;;  %v927_v63 = vshll.u32 %v879_v52, 16  ;;  %v4398_v10 = vld [vmem:[#allocation2 + $0x1c] sm:$0x1]  ;;  %p3881_p12 = pnand %p3880_p7, %p4712_p4 }
  0xd8   : > { %v499_v29 = vsel %vm4345_vm8, %v494_v27, %v498_v24  ;;  %v699_v1 = vrot.slane %v4359_v7, 5  ;;  %v3028_v2 = vrot.slane %v673_v54, 9  ;;  %v898_v5 = vrot.slane %v896_v50, 4  ;;  %v4402_v13 = vld [vmem:[#allocation2 + $0x24] sm:$0x1]  ;;  %v3650_v46 = vld [vmem:[#allocation7 + $0x48] sm:$0xff]  }
  0xd9   : > { %v513_v31 = vsel %vm4345_vm8, %v508_v28, %v512_v26  ;;  %v901_v6 = vrot.slane %v899_v51, 5  ;;  %v696_v8 = vsel %vm4380_vm12, %v3027_v56, %v695_v55  ;;  %v912_v7 = vrot.slane %v910_v57, 4  ;;  %v1019_v24 = vld [vmem:[#allocation2 + $0x8] sm:$0xe]  ;;  %v1020_v27 = vld [vmem:[#allocation2 + $0x10] sm:$0xe]  ;;  %p3882_p13 = pneg %p3881_p12 }
  0xda   : > { %v3014_v33 = vcombine.low %v499_v29, %v513_v31  ;;  %v915_v14 = vrot.slane %v913_v58, 5  ;;  %v888_v15 = vor.u32 %v887_v61, %v884_v59  ;;  %v891_v16 = vshll.u32 %v4394_v3, 16  ;;  %v3647_v25 = vld [vmem:[#allocation2 + $0x8] ss:$8 sps:$4 sm:$0xff]   ;;  %v3646_v29 = vld [vmem:[#allocation7 + $0x38] sm:$0xff]   ;;  %s3968_s8 = smov [#allocation15]  }
  0xdb   : > { %v926_v17 = vrot.slane %v924_v62, 4  ;;  %v929_v18 = vrot.slane %v927_v63, 5  ;;  %v700_v19 = vsel %vm4380_vm12, %v3028_v2, %v699_v1  ;;  %v902_v20 = vor.u32 %v901_v6, %v898_v5  ;;  %358 = vst.msk [vmem:[#allocation3 + $0x8] sm:$0xf] %vm354_vm13, %v3967_v0  ;;  %360 = vst.msk [vmem:[#allocation3 + $0x10] sm:$0xf] %vm354_vm13, %v3967_v0 }
  0xdc   : > { %3285 = vmatmul.mubr.msk.bf16.vlgmr.msra.gmra.mrb[0].mxu0 %vm537_vm9, %v3014_v33  ;;  %v905_v21 = vshll.u32 %v4396_v9, 16  ;;  %v919_v22 = vshll.u32 %v4398_v10, 16  ;;  %v933_v23 = vshll.u32 %v4402_v13, 16  ;;  %v916_v26 = vor.u32 %v915_v14, %v912_v7  ;;  %364 = vst.msk [vmem:[#allocation3 + $0x20] sm:$0xf] %vm354_vm13, %v3967_v0  ;;  %v3651_v48 = vld [vmem:[#allocation7 + $0x50] sm:$0xff]  }
  0xdd   : > { %3289 = vmatpush3.bf16.msra.mxu0 %v4310_v12  ;;  %3292 = vmatprep.mubr.msk.bf16.mxu0 %vm537_vm9, %v3019_v32  ;;  %v688_v12 = vsel %vm4380_vm12, %v3025_v40, %v687_v37  ;;  %v3030_v28 = vcombine.low %v696_v8, %v700_v19  ;;  %v889_v31 = vrot.slane %v888_v15, 4  ;;  %v893_v32 = vrot.slane %v891_v16, 5  ;;  %366 = vst.msk [vmem:[#allocation3 + $0x28] sm:$0xf] %vm354_vm13, %v3967_v0  ;;  %v3649_v30 = vld [vmem:[#allocation2 + $0x18] ss:$8 sps:$4 sm:$0xff]  }
  0xde   : > { %3290 = vmatprep.subr.bf16.mxu0 %v3641_v34  ;;  %v3029_v49 = vcombine.low %v688_v12, %v692_v43  ;;  %v930_v33 = vor.u32 %v929_v18, %v926_v17  ;;  %v907_v35 = vrot.slane %v905_v21, 5  ;;  %v921_v36 = vrot.slane %v919_v22, 5  ;;  %v3648_v12 = vld [vmem:[#allocation7 + $0x40] sm:$0xff]   ;;  %357 = vst.msk [vmem:[#allocation3 + $0x4] sm:$0x1] %vm356_vm14, %v3967_v0  ;;  %v3654_v17 = vld [vmem:[#allocation7 + $0x68] sm:$0xff]  }
  0xdf   : > { %v3047_v37 = vrot.slane %v1019_v24, 9  ;;  %v935_v38 = vrot.slane %v933_v23, 5  ;;  %v3048_v40 = vrot.slane %v1020_v27, 9  ;;  %v1037_v11 = vrot.slane %v4396_v9, 5  ;;  %363 = vst.msk [vmem:[#allocation3 + $0x1c] sm:$0x1] %vm356_vm14, %v3967_v0 }
  0xe0   : > { %v917_v42 = vrot.slane %v916_v26, 4  ;;  %v931_v43 = vrot.slane %v930_v33, 4  ;;  %367 = vst.msk [vmem:[#allocation3 + $0x2c] sm:$0x1] %vm356_vm14, %v3967_v0  ;;  %359 = vst.msk [vmem:[#allocation3 + $0xc] sm:$0x1] %vm356_vm14, %v3967_v0  ;;  %v894_v44 = vsel %vm4345_vm8, %v889_v31, %v893_v32 }
  0xe1   : > { %3291 = vmatpush3.bf16.msra.mxu0 %v3641_v34  ;;  %v903_v34 = vrot.slane %v902_v20, 4  ;;  %361 = vst.msk [vmem:[#allocation3 + $0x14] sm:$0x1] %vm356_vm14, %v3967_v0  ;;  %365 = vst.msk [vmem:[#allocation3 + $0x24] sm:$0x1] %vm356_vm14, %v3967_v0  ;;  %v1038_v51 = vsel %vm4380_vm12, %v3048_v40, %v1037_v11  ;;  %v1041_v61 = vrot.slane %v4398_v10, 5 }
  0xe2   : > { %3296 = vmatprep.subr.bf16.mxu0 %v3642_v39  ;;  %v922_v0 = vsel %vm4345_vm8, %v917_v42, %v921_v36  ;;  %v1021_v54 = vld [vmem:[#allocation2 + $0x18] sm:$0xe]  ;;  %v1022_v55 = vld [vmem:[#allocation2 + $0x20] sm:$0xe]  ;;  %v1220_v57 = vld [vmem:[#allocation2 + $0x10] sm:$0xf] }
  0xe3   : > { %v908_v45 = vsel %vm4345_vm8, %v903_v34, %v907_v35  ;;  %v1222_v58 = vld [vmem:[#allocation2 + $0x18] sm:$0xf]  ;;  %v3049_v59 = vrot.slane %v1021_v54, 9  ;;  %v3050_v62 = vrot.slane %v1022_v55, 9  ;;  %v1045_v63 = vrot.slane %v4402_v13, 5  ;;  %v3653_v1 = vld [vmem:[#allocation7 + $0x60] sm:$0xff]  }
  0xe4   : > { %v1229_v2 = vshrl.u32 %v1220_v57, 16  ;;  %v1243_v5 = vshrl.u32 %v1222_v58, 16  ;;  %v1246_v6 = vshll.u32 %v1222_v58, 16  ;;  %v1221_v15 = vld [vmem:[#allocation2 + $0x14] sm:$0x1]  ;;  %s3883_s11 = sshll.u32 %s3968_s8, 4  ;;  %s3884_s11 = int_to_ptr.vmem [resolvable:$false] %s3883_s11 }
  0xe5   : > { %v1046_v9 = vsel %vm4380_vm12, %v3050_v62, %v1045_v63  ;;  %v1223_v13 = vld [vmem:[#allocation2 + $0x1c] sm:$0x1]  ;;  %v3655_v18 = vld [vmem:[#allocation2 + $0x10] ss:$8 sps:$4 sm:$0xff]   ;;  %v1238_v20 = vshll.u32 %v1221_v15, 16  ;;  %v1380_v55 = vrot.slane %v1221_v15, 5  ;;  %p3886_p1 = scmp.lt.s32.totalorder %s4622_s19, %s3884_s11 }
  0xe6   : > { %v1231_v8 = vrot.slane %v1229_v2, 4  ;;  %v1245_v10 = vrot.slane %v1243_v5, 4  ;;  %v1248_v14 = vrot.slane %v1246_v6, 5  ;;  %v1252_v22 = vshll.u32 %v1223_v13, 16  ;;  %v1224_v23 = vld [vmem:[#allocation2 + $0x20] sm:$0xf] }
  0xe7   : > { %v1226_v24 = vld [vmem:[#allocation2 + $0x28] sm:$0xf]  ;;  %v1260_v26 = vshll.u32 %v1224_v23, 16  ;;  %v1240_v32 = vrot.slane %v1238_v20, 5  ;;  %v1225_v35 = vld [vmem:[#allocation2 + $0x24] sm:$0x1] }
  0xe8   : > { %3293 = vmatmul.mubr.msk.bf16.vlgmr.msra.gmra.mrb[0].mxu0 %vm537_vm9, %v3020_v47  ;;  %v3041_v47 = vcombine.low %v894_v44, %v908_v45  ;;  %v1249_v21 = vor.u32 %v1248_v14, %v1245_v10  ;;  %v1271_v27 = vshrl.u32 %v1226_v24, 16  ;;  %v1254_v34 = vrot.slane %v1252_v22, 5  ;;  %v1227_v42 = vld [vmem:[#allocation2 + $0x2c] sm:$0x1]  ;;  %v1369_v5 = vld [vmem:[#allocation2 + $0x28] sm:$0xe] }
  0xe9   : > { %3297 = vmatpush3.bf16.msra.mxu0 %v3642_v39  ;;  %3300 = vmatprep.mubr.msk.bf16.mxu0 %vm537_vm9, %v3029_v49  ;;  %v1033_v39 = vrot.slane %v4394_v3, 5  ;;  %v936_v49 = vsel %vm4345_vm8, %v931_v43, %v935_v38  ;;  %v1232_v3 = vshll.u32 %v1220_v57, 16  ;;  %v1266_v43 = vshll.u32 %v1225_v35, 16  ;;  %v3660_v2 = vld [vmem:[#allocation7 + $0x88] sm:$0xff]   ;;  %v3661_v15 = vld [vmem:[#allocation9] sm:$0xff]   ;;  %s3885_s12 = scalar_lea.vmem %s3884_s11, 512 }
  0xea   : > { %3298 = vmatprep.subr.bf16.mxu0 %v3644_v53  ;;  %v3042_v52 = vcombine.low %v922_v0, %v936_v49  ;;  %v1250_v33 = vrot.slane %v1249_v21, 4  ;;  %v1273_v38 = vrot.slane %v1271_v27, 4  ;;  %v1367_v0 = vld [vmem:[#allocation2 + $0x18] sm:$0xe]  ;;  %v1384_v57 = vrot.slane %v1223_v13, 5  ;;  %v3662_v13 = vld [vmem:[#allocation9 + $0x40] sm:$0xff]   ;;  %p3887_p3 = scmp.lt.s32.totalorder %s3885_s12, %s3879_s16 }
  0xeb   : > { %v1034_v50 = vsel %vm4380_vm12, %v3047_v37, %v1033_v39  ;;  %v1234_v7 = vrot.slane %v1232_v3, 5  ;;  %v1262_v37 = vrot.slane %v1260_v26, 5  ;;  %v1368_v3 = vld [vmem:[#allocation2 + $0x20] sm:$0xe]  ;;  %3384 = vmatprep.subr.bf16.mxu1 %v3662_v13  ;;  %v3667_v20 = vld [vmem:[#allocation9 + $0x18] sm:$0xff]   ;;  %v4483_v22 = vld [vmem:[#allocation9 + $0x60] sm:$0xff]  }
  0xec   : > { %v3051_v56 = vcombine.low %v1034_v50, %v1038_v51  ;;  %v1255_v11 = vsel %vm4345_vm8, %v1250_v33, %v1254_v34  ;;  %v1268_v50 = vrot.slane %v1266_v43, 5  ;;  %v3071_v6 = vrot.slane %v1368_v3, 9  ;;  %3385 = vmatpush3.bf16.msra.mxu1 %v3662_v13  ;;  %v3669_v21 = vld [vmem:[#allocation9 + $0x58] sm:$0xff]   ;;  %p3888_p2 = por %p3887_p3, %p3886_p1 }
  0xed   : > { %3299 = vmatpush3.bf16.msra.mxu0 %v3644_v53  ;;  %v3652_v53 = vld [vmem:[#allocation7 + $0x58] sm:$0xff]   ;;  %v1235_v19 = vor.u32 %v1234_v7, %v1231_v8  ;;  %v1392_v8 = vrot.slane %v1227_v42, 5 }
  0xee   : > { %3304 = vmatprep.subr.bf16.mxu0 %v3645_v4  ;;  %p3889_p8 = pnand %p3888_p2, %p3882_p13 }
  0xef   : > { %v1236_v31 = vrot.slane %v1235_v19, 4  ;;  %v3666_v19 = vld [vmem:[#allocation9 + $0x50] sm:$0xff]  }
  0xf1   : > { %v1241_v40 = vsel %vm4345_vm8, %v1236_v31, %v1240_v32 }
  0xf4   : > { %3301 = vmatmul.mubr.msk.bf16.vlgmr.msra.gmra.mrb[0].mxu0 %vm537_vm9, %v3030_v28  ;;  %v1274_v28 = vshll.u32 %v1226_v24, 16  ;;  %v3079_v24 = vld [vmem:[#allocation12] ss:$0 sm:$0xff] }
  0xf5   : > { %3305 = vmatpush3.bf16.msra.mxu0 %v3645_v4  ;;  %3308 = vmatprep.mubr.msk.bf16.mxu0 %vm537_vm9, %v3647_v25  ;;  %v1042_v4 = vsel %vm4380_vm12, %v3049_v59, %v1041_v61  ;;  %v1257_v25 = vshrl.u32 %v1224_v23, 16  ;;  %v4485_v23 = vld [vmem:[#allocation10] sm:$0xff]  }
  0xf6   : > { %3306 = vmatprep.subr.bf16.mxu0 %v3646_v29  ;;  %v3052_v16 = vcombine.low %v1042_v4, %v1046_v9  ;;  %v1276_v39 = vrot.slane %v1274_v28, 5  ;;  %v1388_v4 = vrot.slane %v1225_v35, 5  ;;  %v3072_v9 = vrot.slane %v1369_v5, 9 }
  0xf7   : > { %v1259_v36 = vrot.slane %v1257_v25, 4 }
  0xf8   : > { %v1277_v45 = vor.u32 %v1276_v39, %v1273_v38  ;;  %v1389_v7 = vsel %vm4380_vm12, %v3071_v6, %v1388_v4  ;;  %v1393_v10 = vsel %vm4380_vm12, %v3072_v9, %v1392_v8  ;;  %v1558_v4 = vld [vmem:[#allocation3 + $0x10] sm:$0xf]  ;;  %v1561_v9 = vld [vmem:[#allocation3 + $0x14] sm:$0x1] }
  0xf9   : > { %3307 = vmatpush3.bf16.msra.mxu0 %v3646_v29  ;;  %v3656_v29 = vld [vmem:[#allocation7 + $0x70] sm:$0xff]   ;;  %v1263_v44 = vor.u32 %v1262_v37, %v1259_v36  ;;  %v3074_v14 = vcombine.low %v1389_v7, %v1393_v10 }
  0xfa   : > { %3312 = vmatprep.subr.bf16.mxu0 %v3648_v12  ;;  %v1278_v51 = vrot.slane %v1277_v45, 4 }
  0xfb   : > { %v1264_v49 = vrot.slane %v1263_v44, 4 }
  0xfd   : > { %v1269_v58 = vsel %vm4345_vm8, %v1264_v49, %v1268_v50 }
 0x100   : > { %3309 = vmatmul.mubr.msk.bf16.vlgmr.msra.gmra.mrb[0].mxu0 %vm537_vm9, %v3649_v30  ;;  %v3063_v30 = vcombine.low %v1241_v40, %v1255_v11 }
 0x101   : > { %3313 = vmatpush3.bf16.msra.mxu0 %v3648_v12  ;;  %3316 = vmatprep.mubr.msk.bf16.mxu0 %vm537_vm9, %v3041_v47  ;;  %v3657_v12 = vld [vmem:[#allocation2 + $0x20] ss:$8 sps:$4 sm:$0xff]   ;;  %v3658_v47 = vld [vmem:[#allocation7 + $0x78] sm:$0xff]  }
 0x102   : > { %3314 = vmatprep.subr.bf16.mxu0 %v3650_v46 }
 0x105   : > { %3315 = vmatpush3.bf16.msra.mxu0 %v3650_v46  ;;  %v1280_v46 = vshll.u32 %v1227_v42, 16  ;;  %v1564_v42 = vld [vmem:[#allocation3 + $0x18] sm:$0xf] }
 0x106   : > { %3320 = vmatprep.subr.bf16.mxu0 %v3651_v48 }
 0x10c   : > { %3317 = vmatmul.mubr.msk.bf16.vlgmr.msra.gmra.mrb[0].mxu0 %vm537_vm9, %v3042_v52  ;;  %v1282_v52 = vrot.slane %v1280_v46, 5 }
 0x10d   : > { %3321 = vmatpush3.bf16.msra.mxu0 %v3651_v48  ;;  %3324 = vmatprep.mubr.msk.bf16.mxu0 %vm537_vm9, %v3051_v56  ;;  %v1366_v48 = vld [vmem:[#allocation2 + $0x10] sm:$0xe]  ;;  %v3070_v56 = vrot.slane %v1367_v0, 9 }
 0x10e   : > { %3322 = vmatprep.subr.bf16.mxu0 %v3652_v53  ;;  %v3069_v54 = vrot.slane %v1366_v48, 9  ;;  %v1283_v59 = vsel %vm4345_vm8, %v1278_v51, %v1282_v52  ;;  %v1555_v48 = vld [vmem:[#allocation3 + $0xc] sm:$0x1]  ;;  %v1570_v52 = vld [vmem:[#allocation3 + $0x20] sm:$0xf] }
 0x10f   : > { %v1385_v62 = vsel %vm4380_vm12, %v3070_v56, %v1384_v57  ;;  %v3064_v63 = vcombine.low %v1269_v58, %v1283_v59  ;;  %v1573_v58 = vld [vmem:[#allocation3 + $0x24] sm:$0x1] }
 0x110   : > { %v1381_v61 = vsel %vm4380_vm12, %v3069_v54, %v1380_v55 }
 0x111   : > { %3323 = vmatpush3.bf16.msra.mxu0 %v3652_v53  ;;  %v3659_v53 = vld [vmem:[#allocation7 + $0x80] sm:$0xff]  }
 0x112   : > { %3328 = vmatprep.subr.bf16.mxu0 %v3653_v1 }
 0x118   : > { %3325 = vmatmul.mubr.msk.bf16.vlgmr.msra.gmra.mrb[0].mxu0 %vm537_vm9, %v3052_v16  ;;  %v3663_v16 = vld [vmem:[#allocation9 + $0x8] sm:$0xff]  }
 0x119   : > { %3329 = vmatpush3.bf16.msra.mxu0 %v3653_v1  ;;  %3332 = vmatprep.mubr.msk.bf16.mxu0 %vm537_vm9, %v3655_v18  ;;  %v3073_v1 = vcombine.low %v1381_v61, %v1385_v62  ;;  %v3665_v18 = vld [vmem:[#allocation9 + $0x10] sm:$0xff]  }
 0x11a   : > { %3330 = vmatprep.subr.bf16.mxu0 %v3654_v17 }
 0x11d   : > { %3331 = vmatpush3.bf16.msra.mxu0 %v3654_v17  ;;  %v3664_v17 = vld [vmem:[#allocation9 + $0x48] sm:$0xff]  }
 0x11e   : > { %3336 = vmatprep.subr.bf16.mxu0 %v3656_v29  ;;  %3386 = vmatprep.subr.bf16.mxu1 %v3664_v17 }
 0x11f   : > { %3387 = vmatpush3.bf16.msra.mxu1 %v3664_v17 }
 0x120   : > { %3388 = vmatprep.subr.bf16.mxu1 %v3666_v19 }
 0x123   : > { %3389 = vmatpush3.bf16.msra.mxu1 %v3666_v19 }
 0x124   : > { %3333 = vmatmul.mubr.msk.bf16.vlgmr.msra.gmra.mrb[0].mxu0 %vm537_vm9, %v3657_v12  ;;  %3390 = vmatprep.subr.bf16.mxu1 %v3669_v21  ;;  %v1567_v12 = vld [vmem:[#allocation3 + $0x1c] sm:$0x1] }
 0x125   : > { %3337 = vmatpush3.bf16.msra.mxu0 %v3656_v29  ;;  %3340 = vmatprep.mubr.msk.bf16.mxu0 %vm537_vm9, %v3063_v30 }
 0x126   : > { %3338 = vmatprep.subr.bf16.mxu0 %v3658_v47 }
 0x127   : > { %3391 = vmatpush3.bf16.msra.mxu1 %v3669_v21  ;;  %v1921_v21 = vld [vmem:[#allocation3] sm:$0xe] }
 0x128   : > { %3396 = vmatprep.subr.bf16.mxu1 %v4483_v22 }
 0x129   : > { %3339 = vmatpush3.bf16.msra.mxu0 %v3658_v47  ;;  %v1550_v47 = vld [vmem:[#allocation3 + $0x8] sm:$0xf] }
 0x12a   : > { %3344 = vmatprep.subr.bf16.mxu0 %v3659_v53 }
 0x130   : > { %3341 = vmatmul.mubr.msk.bf16.vlgmr.msra.gmra.mrb[0].mxu0 %vm537_vm9, %v3064_v63 }
 0x131   : > { %3345 = vmatpush3.bf16.msra.mxu0 %v3659_v53  ;;  %3348 = vmatprep.mubr.msk.bf16.mxu0 %vm537_vm9, %v3073_v1  ;;  %v1759_v1 = vld [vmem:[#allocation3] sm:$0xf] }
 0x132   : > { %3346 = vmatprep.subr.bf16.mxu0 %v3660_v2  ;;  %v1771_v17 = vshll.u32 %v1759_v1, 16 }
 0x135   : > { %3347 = vmatpush3.bf16.msra.mxu0 %v3660_v2 }
 0x136   : > { %3352 = vmatprep.subr.bf16.mxu0 %v3661_v15 }
 0x13c   : > { %3349 = vmatmul.mubr.msk.bf16.vlgmr.msra.gmra.mrb[0].mxu0 %vm537_vm9, %v3074_v14 }
 0x13d   : > { %3353 = vmatpush3.bf16.msra.mxu0 %v3661_v15 }
 0x13e   : > { %3354 = vmatprep.subr.bf16.mxu0 %v3663_v16 }
 0x141   : > { %3355 = vmatpush3.bf16.msra.mxu0 %v3663_v16  ;;  %v1768_v16 = vshrl.u32 %v1759_v1, 16 }
 0x142   : > { %3356 = vmatprep.subr.bf16.mxu0 %v3665_v18 }
 0x145   : > { %3357 = vmatpush3.bf16.msra.mxu0 %v3665_v18 }
 0x146   : > { %3358 = vmatprep.subr.bf16.mxu0 %v3667_v20 }
 0x149   : > { %3359 = vmatpush3.bf16.msra.mxu0 %v3667_v20  ;;  %v1760_v20 = vld [vmem:[#allocation3 + $0x4] sm:$0x1] }
 0x14a   : > { %3364 = vmatprep.subr.bf16.mxu0 %v4485_v23 }
 0x20f   : > { %v3350_v25 = vpop.f32.mrb[0].mxu0 }
 0x210   : > { %v1485_v26 = vadd.f32 %v3350_v25, %v3079_v24  ;;  %v1457_v27 = vpop.f32.mrb[1].mxu0  ;;  %v1773_v25 = vrot.slane %v1771_v17, 5 }
 0x211   : > { %v1483_v28 = vadd.f32 %v3079_v24, %v1457_v27  ;;  %v3351_v29 = vpop.f32.mrb[2].mxu0  ;;  %v3106_v27 = vrot.slane %v1921_v21, 9 }
 0x212   : > { %v1489_v31 = vmax.f32 %v1485_v26, 0.0  ;;  %v1486_v32 = vadd.f32 %v3351_v29, %v3079_v24  ;;  %v1460_v33 = vpop.f32.mrb[3].mxu0  ;;  %v1777_v26 = vshll.u32 %v1760_v20, 16 }
 0x213   : > { %v1487_v34 = vmax.f32 %v1483_v28, 0.0  ;;  %v1484_v35 = vadd.f32 %v3079_v24, %v1460_v33  ;;  %v1770_v24 = vrot.slane %v1768_v16, 4  ;;  %v1935_v28 = vrot.slane %v1760_v20, 5 }
 0x214   : > { %v3183_v36 = vpack.c.bf16 %v1489_v31, %v1489_v31  ;;  %v1490_v37 = vmax.f32 %v1486_v32, 0.0 }
 0x215   : > { %v3181_v38 = vpack.c.bf16 %v1487_v34, %v1487_v34  ;;  %v1488_v39 = vmax.f32 %v1484_v35, 0.0 }
 0x216   : > { %v1524_v40 = vshrl.u32 %v3183_v36, 16  ;;  %v3184_v11 = vpack.c.bf16 %v1490_v37, %v1490_v37  ;;  %v1527_v45 = vshll.u32 %v3183_v36, 16  ;;  %v3675_v37 = vld [vmem:[#allocation10 + $0x8] sm:$0xff]  }
 0x217   : > { %v1508_v43 = vshrl.u32 %v3181_v38, 16  ;;  %v3182_v30 = vpack.c.bf16 %v1488_v39, %v1488_v39  ;;  %v1511_v51 = vshll.u32 %v3181_v38, 16  ;;  %v3705_v38 = vld [vmem:[%s4255_s15] sm:$0xf]  ;;  %v3706_v39 = vld [vmem:[%s4255_s15 + $0x4] sm:$0xf] }
 0x218   : > { %v1526_v44 = vrot.slane %v1524_v40, 7  ;;  %v1532_v0 = vshrl.u32 %v3184_v11, 16  ;;  %v1535_v57 = vshll.u32 %v3184_v11, 16  ;;  %v3092_v40 = vcombine.low %v3705_v38, %v3706_v39 }
 0x219   : > { %v1510_v50 = vrot.slane %v1508_v43, 7  ;;  %v1516_v53 = vshrl.u32 %v3182_v30, 16  ;;  %v1519_v63 = vshll.u32 %v3182_v30, 16  ;;  %v1774_v11 = vor.u32 %v1773_v25, %v1770_v24 }
 0x21a   : > { %v1529_v54 = vor.u32 %v1527_v45, %v1526_v44  ;;  %v1530_v55 = vrot.slane %v1526_v44, 4  ;;  %v1534_v56 = vrot.slane %v1532_v0, 7  ;;  %v1779_v0 = vrot.slane %v1777_v26, 5 }
 0x21b   : > { %v1513_v59 = vor.u32 %v1511_v51, %v1510_v50  ;;  %v1514_v61 = vrot.slane %v1510_v50, 4  ;;  %v1518_v62 = vrot.slane %v1516_v53, 7  ;;  %v1775_v51 = vrot.slane %v1774_v11, 4 }
 0x21c   : > { %v1565_v2 = vsel %vm4491_vm15, %v1529_v54, %v1564_v42  ;;  %v1568_v3 = vsel %vm4497_vm0, %v1530_v55, %v1567_v12  ;;  %v1537_v5 = vor.u32 %v1535_v57, %v1534_v56  ;;  %v1538_v6 = vrot.slane %v1534_v56, 4  ;;  %v3674_v54 = vld [vmem:[#allocation9 + $0x68] sm:$0xff]  }
 0x21d   : > { %1566 = vst [vmem:[#allocation3 + $0x18] sm:$0xf] %v1565_v2  ;;  %1569 = vst [vmem:[#allocation3 + $0x1c] sm:$0x1] %v1568_v3  ;;  %v1551_v8 = vsel %vm4491_vm15, %v1513_v59, %v1550_v47  ;;  %v1556_v7 = vsel %vm4497_vm0, %v1514_v61, %v1555_v48  ;;  %v1521_v10 = vor.u32 %v1519_v63, %v1518_v62  ;;  %v1522_v14 = vrot.slane %v1518_v62, 4 }
 0x21e   : > { %1552 = vst [vmem:[#allocation3 + $0x8] sm:$0xf] %v1551_v8  ;;  %1557 = vst [vmem:[#allocation3 + $0xc] sm:$0x1] %v1556_v7  ;;  %v1571_v15 = vsel %vm4491_vm15, %v1537_v5, %v1570_v52  ;;  %v1574_v13 = vsel %vm4497_vm0, %v1538_v6, %v1573_v58  ;;  %v1936_v12 = vsel %vm4380_vm12, %v3106_v27, %v1935_v28 }
 0x21f   : > { %1572 = vst [vmem:[#allocation3 + $0x20] sm:$0xf] %v1571_v15  ;;  %1575 = vst [vmem:[#allocation3 + $0x24] sm:$0x1] %v1574_v13  ;;  %v1559_v18 = vsel %vm4491_vm15, %v1521_v10, %v1558_v4  ;;  %v1562_v19 = vsel %vm4497_vm0, %v1522_v14, %v1561_v9  ;;  %v1780_v6 = vsel %vm4345_vm8, %v1775_v51, %v1779_v0  ;;  %v3676_v10 = vld [vmem:[#allocation9 + $0x70] sm:$0xff]  }
 0x220   : > { %1560 = vst [vmem:[#allocation3 + $0x10] sm:$0xf] %v1559_v18  ;;  %1563 = vst [vmem:[#allocation3 + $0x14] sm:$0x1] %v1562_v19  ;;  %v3707_v14 = vld [vmem:[%s4255_s15 + $0xc] sm:$0xf] }
 0x221   : > { %v3708_v15 = vld [vmem:[%s4255_s15 + $0x8] sm:$0xf] }
 0x222   : > { %v3093_v13 = vcombine.low %v3708_v15, %v3707_v14 }
 0x224   : > { %v4517_v29 = vld [vmem:[#allocation3 + $0x1c] sm:$0x1]  ;;  %v1924_v31 = vld [vmem:[#allocation3 + $0x18] sm:$0xe] }
 0x225   : > { %v3668_v32 = vld [vmem:[#allocation3] ss:$8 sps:$4 sm:$0xff]   ;;  %v4519_v33 = vld [vmem:[#allocation3 + $0xc] sm:$0x1]  ;;  %v3109_v36 = vrot.slane %v1924_v31, 9  ;;  %v1947_v30 = vrot.slane %v4517_v29, 5 }
 0x226   : > { %v1922_v34 = vld [vmem:[#allocation3 + $0x8] sm:$0xe]  ;;  %v1939_v35 = vrot.slane %v4519_v33, 5  ;;  %3360 = vmatprep.mubr.msk.bf16.mxu0 %vm1626_vm1, %v3668_v32  ;;  %v1791_v57 = vshll.u32 %v4519_v33, 16  ;;  %v1765_v7 = vld [vmem:[#allocation3 + $0x18] sm:$0xf] }
 0x227   : > { %v3670_v42 = vld [vmem:[#allocation3 + $0x10] ss:$8 sps:$4 sm:$0xff]   ;;  %v3107_v43 = vrot.slane %v1922_v34, 9  ;;  %v4528_v44 = vld [vmem:[#allocation3 + $0x14] sm:$0x1]  ;;  %v1948_v53 = vsel %vm4380_vm12, %v3109_v36, %v1947_v30  ;;  %v1810_v26 = vshrl.u32 %v1765_v7, 16 }
 0x228   : > { %v1923_v45 = vld [vmem:[#allocation3 + $0x10] sm:$0xe]  ;;  %3361 = vmatmul.mubr.msk.bf16.vlgmr.msra.gmra.mrb[4].mxu0 %vm1626_vm1, %v3670_v42  ;;  %v1943_v48 = vrot.slane %v4528_v44, 5  ;;  %v1761_v50 = vld [vmem:[#allocation3 + $0x8] sm:$0xf]  ;;  %v1793_v19 = vrot.slane %v1791_v57, 5 }
 0x229   : > { %v1940_v46 = vsel %vm4380_vm12, %v3107_v43, %v1939_v35  ;;  %v3108_v47 = vrot.slane %v1923_v45, 9  ;;  %3365 = vmatpush3.bf16.msra.mxu0 %v4485_v23  ;;  %3368 = vmatprep.mubr.msk.bf16.mxu0 %vm537_vm9, %v3092_v40  ;;  %v1782_v55 = vshrl.u32 %v1761_v50, 16  ;;  %v1785_v56 = vshll.u32 %v1761_v50, 16  ;;  %v3677_v23 = vld [vmem:[#allocation9 + $0x20] sm:$0xff]   ;;  %v2153_v59 = vld [vmem:[#allocation3 + $0x8] sm:$0xf] }
 0x22a   : > { %v3110_v49 = vcombine.low %v1936_v12, %v1940_v46  ;;  %3366 = vmatprep.subr.bf16.mxu0 %v3675_v37  ;;  %v3673_v61 = vld [vmem:[#allocation3 + $0x8] ss:$8 sps:$4 sm:$0xff]   ;;  %v2162_v2 = vshrl.u32 %v2153_v59, 16  ;;  %v2165_v3 = vshll.u32 %v2153_v59, 16  ;;  %v4549_v16 = vld [vmem:[#allocation3 + $0x14] sm:$0x1] }
 0x22b   : > { %v1944_v52 = vsel %vm4380_vm12, %v3108_v47, %v1943_v48  ;;  %v1784_v62 = vrot.slane %v1782_v55, 4  ;;  %v1787_v63 = vrot.slane %v1785_v56, 5  ;;  %v2155_v1 = vld [vmem:[#allocation3 + $0x10] sm:$0xf]  ;;  %v1813_v27 = vshll.u32 %v1765_v7, 16  ;;  %v3679_v31 = vld [vmem:[#allocation9 + $0x28] sm:$0xff]  }
 0x22c   : > { %3392 = vmatprep.mubr.msk.bf16.mxu1 %vm1626_vm1, %v3110_v49  ;;  %v3111_v58 = vcombine.low %v1944_v52, %v1948_v53  ;;  %v2176_v5 = vshrl.u32 %v2155_v1, 16  ;;  %v2179_v9 = vshll.u32 %v2155_v1, 16  ;;  %v1763_v8 = vld [vmem:[#allocation3 + $0x10] sm:$0xf]  ;;  %v2164_v17 = vrot.slane %v2162_v2, 4  ;;  %v3678_v36 = vld [vmem:[#allocation9 + $0x78] sm:$0xff]  }
 0x22d   : > { %3367 = vmatpush3.bf16.msra.mxu0 %v3675_v37  ;;  %v1788_v4 = vor.u32 %v1787_v63, %v1784_v62  ;;  %v2167_v18 = vrot.slane %v2165_v3, 5  ;;  %v1796_v24 = vshrl.u32 %v1763_v8, 16  ;;  %v1799_v25 = vshll.u32 %v1763_v8, 16  ;;  %v4553_v32 = vld [vmem:[#allocation3 + $0xc] sm:$0x1]  ;;  %v3681_v30 = vld [vmem:[#allocation9 + $0x80] sm:$0xff]  }
 0x22e   : > { %3393 = vmatmul.mubr.msk.bf16.vlgmr.msra.gmra.mrb[0].mxu1 %vm1626_vm1, %v3111_v58  ;;  %3372 = vmatprep.subr.bf16.mxu0 %v3677_v23  ;;  %v2181_v21 = vrot.slane %v2179_v9, 5  ;;  %v2185_v34 = vshll.u32 %v4549_v16, 16  ;;  %v2159_v40 = vld [vmem:[#allocation3 + $0x20] sm:$0xf]  ;;  %v2171_v11 = vshll.u32 %v4553_v32, 16  ;;  %v1812_v12 = vrot.slane %v1810_v26, 4 }
 0x22f   : > { %3397 = vmatpush3.bf16.msra.mxu1 %v4483_v22  ;;  %3404 = vmatprep.mubr.msk.bf16.mxu1 %vm1626_vm1, %v3673_v61  ;;  %v2178_v22 = vrot.slane %v2176_v5, 4  ;;  %v1789_v20 = vrot.slane %v1788_v4, 4  ;;  %v2168_v37 = vor.u32 %v2167_v18, %v2164_v17  ;;  %v1798_v38 = vrot.slane %v1796_v24, 4  ;;  %v3682_v45 = vld [vmem:[#allocation9 + $0x30] sm:$0xff]   ;;  %v2157_v0 = vld [vmem:[#allocation3 + $0x18] sm:$0xf] }
 0x230   : > { %3398 = vmatprep.subr.bf16.mxu1 %v3674_v54  ;;  %v1801_v39 = vrot.slane %v1799_v25, 5  ;;  %v1815_v43 = vrot.slane %v1813_v27, 5  ;;  %v2187_v47 = vrot.slane %v2185_v34, 5  ;;  %v2204_v49 = vshrl.u32 %v2159_v40, 16  ;;  %v3680_v58 = vld [vmem:[#allocation3 + $0x18] ss:$8 sps:$4 sm:$0xff]  }
 0x231   : > { %v1794_v28 = vsel %vm4345_vm8, %v1789_v20, %v1793_v19  ;;  %v2182_v33 = vor.u32 %v2181_v21, %v2178_v22  ;;  %v2169_v46 = vrot.slane %v2168_v37, 4  ;;  %v2207_v50 = vshll.u32 %v2159_v40, 16  ;;  %v3683_v59 = vld [vmem:[#allocation9 + $0x88] sm:$0xff]   ;;  %v3684_v61 = vld [vmem:[#allocation9 + $0x38] sm:$0xff]   ;;  %v3685_v4 = vld [vmem:[#allocation9 + $0x90] sm:$0xff]  }
 0x232   : > { %v3098_v35 = vcombine.low %v1780_v6, %v1794_v28  ;;  %v1802_v48 = vor.u32 %v1801_v39, %v1798_v38  ;;  %v1805_v51 = vshll.u32 %v4528_v44, 16  ;;  %v2173_v52 = vrot.slane %v2171_v11, 5  ;;  %v2160_v8 = vld [vmem:[#allocation3 + $0x24] sm:$0x1]  ;;  %v2158_v14 = vld [vmem:[#allocation3 + $0x1c] sm:$0x1] }
 0x233   : > { %3399 = vmatpush3.bf16.msra.mxu1 %v3674_v54  ;;  %v2183_v42 = vrot.slane %v2182_v33, 4  ;;  %v1816_v54 = vor.u32 %v1815_v43, %v1812_v12  ;;  %v2190_v55 = vshrl.u32 %v2157_v0, 16  ;;  %v2193_v56 = vshll.u32 %v2157_v0, 16  ;;  %v2316_v18 = vld [vmem:[#allocation3 + $0x10] sm:$0xe]  ;;  %v3686_v22 = vld [vmem:[#allocation9 + $0x98] sm:$0xff]  }
 0x234   : > { %3400 = vmatprep.subr.bf16.mxu1 %v3676_v10  ;;  %3369 = vmatmul.mubr.msk.bf16.vlgmr.msra.gmra.mrb[4].mxu0 %vm537_vm9, %v3093_v13  ;;  %v1819_v57 = vshll.u32 %v4517_v29, 16  ;;  %v1803_v44 = vrot.slane %v1802_v48, 4  ;;  %v2206_v63 = vrot.slane %v2204_v49, 4  ;;  %v2209_v1 = vrot.slane %v2207_v50, 5  ;;  %v2315_v21 = vld [vmem:[#allocation3 + $0x8] sm:$0xe] }
 0x235   : > { %3373 = vmatpush3.bf16.msra.mxu0 %v3677_v23  ;;  %3380 = vmatprep.mubr.msk.bf16.mxu0 %vm1626_vm1, %v3098_v35  ;;  %v2188_v53 = vsel %vm4345_vm8, %v2183_v42, %v2187_v47  ;;  %v2174_v23 = vsel %vm4345_vm8, %v2169_v46, %v2173_v52  ;;  %v1807_v2 = vrot.slane %v1805_v51, 5  ;;  %v1817_v3 = vrot.slane %v1816_v54, 4  ;;  %v3687_v28 = vld [vmem:[#allocation9 + $0xa0] sm:$0xff]   ;;  %v3688_v39 = vld [vmem:[#allocation9 + $0xa8] sm:$0xff]   ;;  %v3690_v42 = vld [vmem:[#allocation9 + $0xb8] sm:$0xff]  }
 0x236   : > { %3374 = vmatprep.subr.bf16.mxu0 %v3679_v31  ;;  %v3126_v62 = vcombine.low %v2174_v23, %v2188_v53  ;;  %v2192_v29 = vrot.slane %v2190_v55, 4  ;;  %v2195_v5 = vrot.slane %v2193_v56, 5  ;;  %v1821_v6 = vrot.slane %v1819_v57, 5  ;;  %v2318_v11 = vld [vmem:[#allocation3 + $0x20] sm:$0xe]  ;;  %v3693_v54 = vld [vmem:[#allocation9 + $0xc8] sm:$0xff]  }
 0x237   : > { %3401 = vmatpush3.bf16.msra.mxu1 %v3676_v10  ;;  %v1808_v9 = vsel %vm4345_vm8, %v1803_v44, %v1807_v2  ;;  %v2210_v7 = vor.u32 %v2209_v1, %v2206_v63  ;;  %v2213_v17 = vshll.u32 %v2160_v8, 16  ;;  %v2199_v19 = vshll.u32 %v2158_v14, 16  ;;  %v2317_v12 = vld [vmem:[#allocation3 + $0x18] sm:$0xe]  ;;  %v2548_v47 = vld [vmem:[#allocation3 + $0x10] sm:$0xf] }
 0x238   : > { %3402 = vmatprep.subr.bf16.mxu1 %v3678_v36  ;;  %v1822_v10 = vsel %vm4345_vm8, %v1817_v3, %v1821_v6  ;;  %v2196_v13 = vor.u32 %v2195_v5, %v2192_v29  ;;  %v3135_v24 = vrot.slane %v2316_v18, 9  ;;  %v2333_v25 = vrot.slane %v4549_v16, 5  ;;  %v3691_v48 = vld [vmem:[#allocation9 + $0xc0] sm:$0xff]   ;;  %v2550_v49 = vld [vmem:[#allocation3 + $0x18] sm:$0xf] }
 0x239   : > { %3375 = vmatpush3.bf16.msra.mxu0 %v3679_v31  ;;  %v3099_v15 = vcombine.low %v1808_v9, %v1822_v10  ;;  %v2211_v20 = vrot.slane %v2210_v7, 4  ;;  %v2215_v27 = vrot.slane %v2213_v17, 5  ;;  %v3134_v31 = vrot.slane %v2315_v21, 9  ;;  %v3692_v57 = vld [vmem:[#allocation3 + $0x10] ss:$8 sps:$4 sm:$0xff]   ;;  %v3698_v21 = vld [vmem:[#allocation9 + $0xe8] sm:$0xff]  }
 0x23a   : > { %3376 = vmatprep.subr.bf16.mxu0 %v3682_v45  ;;  %v2197_v26 = vrot.slane %v2196_v13, 4  ;;  %v2329_v33 = vrot.slane %v4553_v32, 5  ;;  %v2201_v34 = vrot.slane %v2199_v19, 5  ;;  %v3689_v32 = vld [vmem:[#allocation9 + $0xb0] sm:$0xff]   ;;  %v3137_v43 = vrot.slane %v2318_v11, 9  ;;  %v3695_v2 = vld [vmem:[#allocation9 + $0xd8] sm:$0xff]  }
 0x23b   : > { %3403 = vmatpush3.bf16.msra.mxu1 %v3678_v36  ;;  %v2216_v35 = vsel %vm4345_vm8, %v2211_v20, %v2215_v27  ;;  %v2334_v36 = vsel %vm4380_vm12, %v3135_v24, %v2333_v25  ;;  %v2337_v46 = vrot.slane %v2158_v14, 5  ;;  %v2557_v50 = vshrl.u32 %v2548_v47, 16  ;;  %v4592_v1 = vld [vmem:[#allocation3 + $0x1c] sm:$0x1]  ;;  %v2554_v5 = vld [vmem:[#allocation3 + $0x28] sm:$0xf] }
 0x23c   : > { %3408 = vmatprep.subr.bf16.mxu1 %v3681_v30  ;;  %v2202_v37 = vsel %vm4345_vm8, %v2197_v26, %v2201_v34  ;;  %v2330_v38 = vsel %vm4380_vm12, %v3134_v31, %v2329_v33  ;;  %v2560_v51 = vshll.u32 %v2548_v47, 16  ;;  %v2571_v55 = vshrl.u32 %v2550_v49, 16  ;;  %v2552_v9 = vld [vmem:[#allocation3 + $0x20] sm:$0xf]  ;;  %v3699_v31 = vld [vmem:[#allocation9 + $0xf0] sm:$0xff]  }
 0x23d   : > { %3377 = vmatpush3.bf16.msra.mxu0 %v3682_v45  ;;  %v3127_v16 = vcombine.low %v2202_v37, %v2216_v35  ;;  %v3138_v40 = vcombine.low %v2330_v38, %v2334_v36  ;;  %v3136_v45 = vrot.slane %v2317_v12, 9  ;;  %v2574_v56 = vshll.u32 %v2550_v49, 16  ;;  %v3696_v19 = vld [vmem:[#allocation3 + $0x20] ss:$8 sps:$4 sm:$0xff]   ;;  %v2553_v33 = vld [vmem:[#allocation3 + $0x24] sm:$0x1] }
 0x23e   : > { %3405 = vmatmul.mubr.msk.bf16.vlgmr.msra.gmra.mrb[0].mxu1 %vm1626_vm1, %v3680_v58  ;;  %3378 = vmatprep.subr.bf16.mxu0 %v3684_v61  ;;  %v2559_v58 = vrot.slane %v2557_v50, 4  ;;  %v2562_v23 = vrot.slane %v2560_v51, 5  ;;  %v2599_v14 = vshrl.u32 %v2554_v5, 16  ;;  %v2588_v13 = vshll.u32 %v2552_v9, 16  ;;  %v2555_v34 = vld [vmem:[#allocation3 + $0x2c] sm:$0x1] }
 0x23f   : > { %3409 = vmatpush3.bf16.msra.mxu1 %v3681_v30  ;;  %3416 = vmatprep.mubr.msk.bf16.mxu1 %vm1626_vm1, %v3126_v62  ;;  %v2341_v30 = vrot.slane %v2160_v8, 5  ;;  %v2338_v52 = vsel %vm4380_vm12, %v3136_v45, %v2337_v46  ;;  %v2576_v44 = vrot.slane %v2574_v56, 5  ;;  %v4590_v62 = vld [vmem:[#allocation3 + $0x14] sm:$0x1]  ;;  %v3697_v8 = vld [vmem:[#allocation9 + $0xe0] sm:$0xff]   ;;  %v2602_v17 = vshll.u32 %v2554_v5, 16 }
 0x240   : > { %3410 = vmatprep.subr.bf16.mxu1 %v3683_v59  ;;  %v2563_v63 = vor.u32 %v2562_v23, %v2559_v58  ;;  %v2566_v3 = vshll.u32 %v4590_v62, 16  ;;  %v2601_v24 = vrot.slane %v2599_v14, 4  ;;  %v2590_v27 = vrot.slane %v2588_v13, 5  ;;  %v2710_v38 = vld [vmem:[#allocation3 + $0x10] sm:$0xe]  ;;  %v3701_v45 = vld [vmem:[#allocation9 + $0x100] sm:$0xff]  }
 0x241   : > { %3379 = vmatpush3.bf16.msra.mxu0 %v3684_v61  ;;  %v2342_v0 = vsel %vm4380_vm12, %v3137_v43, %v2341_v30  ;;  %v2573_v61 = vrot.slane %v2571_v55, 4  ;;  %v2608_v37 = vshll.u32 %v2555_v34, 16  ;;  %v3162_v12 = vrot.slane %v2710_v38, 9  ;;  %v2712_v60 = vld [vmem:[#allocation3 + $0x20] sm:$0xe]  ;;  %v3704_v56 = vld [vmem:[#allocation9 + $0x118] sm:$0xff]  }
 0x242   : > { %v3139_v53 = vcombine.low %v2338_v52, %v2342_v0  ;;  %v2564_v6 = vrot.slane %v2563_v63, 4  ;;  %v2568_v7 = vrot.slane %v2566_v3, 5  ;;  %v2724_v43 = vrot.slane %v4590_v62, 5  ;;  %v3702_v52 = vld [vmem:[#allocation9 + $0x108] sm:$0xff]   ;;  %v3174_v5 = vld [vmem:[#allocation13] ss:$0 sm:$0xff] }
 0x243   : > { %3411 = vmatpush3.bf16.msra.mxu1 %v3683_v59  ;;  %v3694_v59 = vld [vmem:[#allocation9 + $0xd0] sm:$0xff]   ;;  %v2577_v29 = vor.u32 %v2576_v44, %v2573_v61  ;;  %v2610_v11 = vrot.slane %v2608_v37, 5  ;;  %v2728_v47 = vrot.slane %v4592_v1, 5  ;;  %v2713_v55 = vld [vmem:[#allocation3 + $0x28] sm:$0xe]  ;;  %v2732_v58 = vrot.slane %v2553_v33, 5 }
 0x244   : > { %3412 = vmatprep.subr.bf16.mxu1 %v3685_v4  ;;  %3381 = vmatmul.mubr.msk.bf16.vlgmr.msra.gmra.mrb[4].mxu0 %vm1626_vm1, %v3099_v15  ;;  %v2585_v15 = vshrl.u32 %v2552_v9, 16  ;;  %v2569_v18 = vsel %vm4345_vm8, %v2564_v6, %v2568_v7  ;;  %v2725_v49 = vsel %vm4380_vm12, %v3162_v12, %v2724_v43  ;;  %v3165_v23 = vrot.slane %v2713_v55, 9 }
 0x245   : > { %v2578_v10 = vrot.slane %v2577_v29, 4 }
 0x246   : > { %v2587_v26 = vrot.slane %v2585_v15, 4 }
 0x247   : > { %3413 = vmatpush3.bf16.msra.mxu1 %v3685_v4  ;;  %v2580_v4 = vshll.u32 %v4592_v1, 16 }
 0x248   : > { %3414 = vmatprep.subr.bf16.mxu1 %v3686_v22  ;;  %v2591_v35 = vor.u32 %v2590_v27, %v2587_v26 }
 0x24b   : > { %3415 = vmatpush3.bf16.msra.mxu1 %v3686_v22  ;;  %v2582_v22 = vrot.slane %v2580_v4, 5 }
 0x24c   : > { %3420 = vmatprep.subr.bf16.mxu1 %v3687_v28 }
 0x24d   : > { %v2583_v20 = vsel %vm4345_vm8, %v2578_v10, %v2582_v22 }
 0x24e   : > { %3417 = vmatmul.mubr.msk.bf16.vlgmr.msra.gmra.mrb[0].mxu1 %vm1626_vm1, %v3127_v16  ;;  %v3154_v25 = vcombine.low %v2569_v18, %v2583_v20  ;;  %v2594_v16 = vshll.u32 %v2553_v33, 16 }
 0x24f   : > { %3421 = vmatpush3.bf16.msra.mxu1 %v3687_v28  ;;  %3428 = vmatprep.mubr.msk.bf16.mxu1 %vm1626_vm1, %v3138_v40  ;;  %v2604_v28 = vrot.slane %v2602_v17, 5  ;;  %v2592_v40 = vrot.slane %v2591_v35, 4 }
 0x250   : > { %3422 = vmatprep.subr.bf16.mxu1 %v3688_v39  ;;  %v2596_v30 = vrot.slane %v2594_v16, 5 }
 0x251   : > { %v2605_v36 = vor.u32 %v2604_v28, %v2601_v24 }
 0x253   : > { %3423 = vmatpush3.bf16.msra.mxu1 %v3688_v39  ;;  %v3700_v39 = vld [vmem:[#allocation9 + $0xf8] sm:$0xff]  }
 0x254   : > { %3424 = vmatprep.subr.bf16.mxu1 %v3689_v32 }
 0x257   : > { %3425 = vmatpush3.bf16.msra.mxu1 %v3689_v32  ;;  %v2606_v32 = vrot.slane %v2605_v36, 4 }
 0x258   : > { %3426 = vmatprep.subr.bf16.mxu1 %v3690_v42 }
 0x259   : > { %v2611_v0 = vsel %vm4345_vm8, %v2606_v32, %v2610_v11 }
 0x25b   : > { %3427 = vmatpush3.bf16.msra.mxu1 %v3690_v42  ;;  %v2711_v42 = vld [vmem:[#allocation3 + $0x18] sm:$0xe] }
 0x25c   : > { %3432 = vmatprep.subr.bf16.mxu1 %v3691_v48  ;;  %v3163_v46 = vrot.slane %v2711_v42, 9 }
 0x25e   : > { %3429 = vmatmul.mubr.msk.bf16.vlgmr.msra.gmra.mrb[0].mxu1 %vm1626_vm1, %v3139_v53  ;;  %v2729_v51 = vsel %vm4380_vm12, %v3163_v46, %v2728_v47 }
 0x25f   : > { %3433 = vmatpush3.bf16.msra.mxu1 %v3691_v48  ;;  %3440 = vmatprep.mubr.msk.bf16.mxu1 %vm1626_vm1, %v3692_v57  ;;  %v2597_v48 = vsel %vm4345_vm8, %v2592_v40, %v2596_v30  ;;  %v3166_v53 = vcombine.low %v2725_v49, %v2729_v51  ;;  %v3164_v57 = vrot.slane %v2712_v60, 9 }
 0x260   : > { %3434 = vmatprep.subr.bf16.mxu1 %v3693_v54  ;;  %v3155_v50 = vcombine.low %v2597_v48, %v2611_v0 }
 0x261   : > { %v2733_v61 = vsel %vm4380_vm12, %v3164_v57, %v2732_v58 }
 0x263   : > { %3435 = vmatpush3.bf16.msra.mxu1 %v3693_v54  ;;  %v3703_v54 = vld [vmem:[#allocation9 + $0x110] sm:$0xff]  }
 0x264   : > { %3436 = vmatprep.subr.bf16.mxu1 %v3694_v59 }
 0x267   : > { %3437 = vmatpush3.bf16.msra.mxu1 %v3694_v59  ;;  %v2736_v59 = vrot.slane %v2555_v34, 5 }
 0x268   : > { %3438 = vmatprep.subr.bf16.mxu1 %v3695_v2 }
 0x269   : > { %v2737_v44 = vsel %vm4380_vm12, %v3165_v23, %v2736_v59 }
 0x26a   : > { %v3167_v62 = vcombine.low %v2733_v61, %v2737_v44 }
 0x26b   : > { %3439 = vmatpush3.bf16.msra.mxu1 %v3695_v2 }
 0x26c   : > { %3444 = vmatprep.subr.bf16.mxu1 %v3697_v8 }
 0x26e   : > { %3441 = vmatmul.mubr.msk.bf16.vlgmr.msra.gmra.mrb[0].mxu1 %vm1626_vm1, %v3696_v19 }
 0x26f   : > { %3445 = vmatpush3.bf16.msra.mxu1 %v3697_v8  ;;  %3452 = vmatprep.mubr.msk.bf16.mxu1 %vm1626_vm1, %v3154_v25 }
 0x270   : > { %3446 = vmatprep.subr.bf16.mxu1 %v3698_v21 }
 0x273   : > { %3447 = vmatpush3.bf16.msra.mxu1 %v3698_v21 }
 0x274   : > { %3448 = vmatprep.subr.bf16.mxu1 %v3699_v31 }
 0x277   : > { %3449 = vmatpush3.bf16.msra.mxu1 %v3699_v31 }
 0x278   : > { %3450 = vmatprep.subr.bf16.mxu1 %v3700_v39 }
 0x27b   : > { %3451 = vmatpush3.bf16.msra.mxu1 %v3700_v39 }
 0x27c   : > { %3456 = vmatprep.subr.bf16.mxu1 %v3701_v45 }
 0x27e   : > { %3453 = vmatmul.mubr.msk.bf16.vlgmr.msra.gmra.mrb[0].mxu1 %vm1626_vm1, %v3155_v50 }
 0x27f   : > { %3457 = vmatpush3.bf16.msra.mxu1 %v3701_v45  ;;  %3464 = vmatprep.mubr.msk.bf16.mxu1 %vm1626_vm1, %v3166_v53 }
 0x280   : > { %3458 = vmatprep.subr.bf16.mxu1 %v3702_v52 }
 0x283   : > { %3459 = vmatpush3.bf16.msra.mxu1 %v3702_v52 }
 0x284   : > { %3460 = vmatprep.subr.bf16.mxu1 %v3703_v54 }
 0x287   : > { %3461 = vmatpush3.bf16.msra.mxu1 %v3703_v54 }
 0x288   : > { %3462 = vmatprep.subr.bf16.mxu1 %v3704_v56 }
 0x28b   : > { %3463 = vmatpush3.bf16.msra.mxu1 %v3704_v56 }
 0x28e   : > { %3465 = vmatmul.mubr.msk.bf16.vlgmr.msra.gmra.mrb[0].mxu1 %vm1626_vm1, %v3167_v62 }
 0x317   : > { %v3382_v63 = vpop.f32.mrb[4].mxu0 }
 0x318   : > { %v1902_v1 = vpop.f32.mrb[5].mxu0 }
 0x319   : > { %v3383_v2 = vpop.f32.mrb[6].mxu0 }
 0x31a   : > { %v1905_v3 = vpop.f32.mrb[7].mxu0 }
 0x361   : > { %v3466_v29 = vpop.f32.mrb[0].mxu1 }
 0x362   : > { %v3468_v6 = vadd.f32 %v3466_v29, %v3382_v63  ;;  %v2817_v4 = vpop.f32.mrb[1].mxu1 }
 0x363   : > { %v3469_v9 = vadd.f32 %v2817_v4, %v1902_v1  ;;  %v3467_v8 = vpop.f32.mrb[2].mxu1 }
 0x364   : > { %v2845_v7 = vadd.f32 %v3468_v6, %v3174_v5  ;;  %v3470_v10 = vadd.f32 %v3467_v8, %v3383_v2  ;;  %v2820_v41 = vpop.f32.mrb[3].mxu1 }
 0x365   : > { %v2843_v14 = vadd.f32 %v3469_v9, %v3174_v5  ;;  %v3471_v15 = vadd.f32 %v2820_v41, %v1905_v3 }
 0x366   : > { %v2849_v13 = vmax.f32 %v2845_v7, 0.0  ;;  %v2846_v17 = vadd.f32 %v3470_v10, %v3174_v5 }
 0x367   : > { %v2847_v18 = vmax.f32 %v2843_v14, 0.0  ;;  %v2844_v22 = vadd.f32 %v3471_v15, %v3174_v5 }
 0x368   : > { %v2853_v19 = vpack.c.bf16 %v2849_v13, %v2849_v13  ;;  %v2850_v20 = vmax.f32 %v2846_v17, 0.0 }
 0x369   : > { %v2851_v21 = vpack.c.bf16 %v2847_v18, %v2847_v18  ;;  %v2848_v24 = vmax.f32 %v2844_v22, 0.0 }
 0x36a   : > { %2857 = vst.msk [vmem:[%s338_s28 + $0x8] sm:$0xf] %vm354_vm13, %v2853_v19  ;;  %v2854_v25 = vpack.c.bf16 %v2850_v20, %v2850_v20 }
 0x36b   : > { %2855 = vst.msk [vmem:[%s338_s28] sm:$0xf] %vm354_vm13, %v2851_v21  ;;  %v2852_v26 = vpack.c.bf16 %v2848_v24, %v2848_v24 }
 0x36c   : > { %2858 = vst.msk [vmem:[%s338_s28 + $0xc] sm:$0xf] %vm354_vm13, %v2854_v25 }
 0x36d   : > { %2856 = vst.msk [vmem:[%s338_s28 + $0x4] sm:$0xf] %vm354_vm13, %v2852_v26 }
 0x36e   : > { %3892 = shalt.err (!%p3889_p8)
}
 0x36f   : > { %s3893_s30 = scalar_lea.hbm %s4628_s14, 256  ;;  %s3897_s15 = scalar_lea.hbm %s4681_s6, 512 }
 0x370   : > { %p3894_p6 = scmp.ne.s32.totalorder %s4628_s14, %s3893_s30  ;;  %p3898_p0 = scmp.lt.u32.totalorder %s4628_s14, %s4681_s6 }
 0x371   : > { %p3899_p5 = scmp.lt.u32.totalorder %s3897_s15, %s3893_s30  ;;  %p3901_p7 = scmp.lt.u32.totalorder %s3893_s30, %s4628_s14 }
 0x372   : > { %p3895_p10 = pnand %p3894_p6, %p4712_p4 }
 0x373   : > { %p3900_p9 = por %p3899_p5, %p3898_p0 }
 0x374   : > { %p3896_p11 = pneg %p3895_p10 }
 0x375   : > { %p3902_p12 = por %p3901_p7, %p3900_p9 }
 0x377   : > { %p3903_p13 = pnand %p3902_p12, %p3896_p11 }
 0x379   : > { %3906 = shalt.err (!%p3903_p13)
}
 0x37a   : > { %s3969_s29 = smov 64   ;;  %s3970_s17 = smov 4  }
 0x37b   : > { %3558 = dma.vmem_to_hbm [thread:$0]  (%p4712_p4), %s4622_s19, 256, %s4628_s14, %s2860_s27, %s3969_s29, %s3969_s29, %s3970_s17  }
 0x37c PF: > { %s2888_s16 = sand.u32 1, %s3945_s21   ;;  %p4713_p1 = scmp.ne.s32.totalorder %s4691_s10, 0 }
 0x37d   : > { %p4714_p3 = scmp.ge.s32.totalorder %s3957_s24, 2  ;;  %s2889_s8 = scalar_lea.sflag [#allocation6], %s2888_s16 }
 0x37f   : > { %p3581_p2 = pnand %p4714_p3, %p4713_p1 }
 0x381   : > { %3940 = dma.done.wait (!%p3581_p2), %s2889_s8, 256  }
 0x382   : > { %3942 = vsyncadd (!%p3581_p2), %s2889_s8, 4294967040  ;;  %p22_p8 = scmp.ge.s32.totalorder %s4173_s7, 4   ;;  %s4715_s21 = smov %s3949_s22 }
 0x383   : > { %s4716_s22 = smov %s3953_s23  ;;  %s4717_s23 = smov %s4185_s18 }
 0x384   : > { %s4718_s24 = smov %s4173_s7  ;;  %24 = sbr.rel (!%p22_p8) target bundleno = 8 (0x8), region = 129 }
 0x38b   :  { %2894 = vsyncpa [#allocation5], 1 }
 0x38c   :  { %2896 = vsyncpa [#allocation5 + $0x1], 1 }
 0x38d   :  { %2897 = vsyncpa [#allocation8], 1 }
 0x38e   :  { %2898 = vsyncpa [#allocation11], 1 }
 0x38f   :  { %2899 = vsyncpa [#allocation14], 1 }
 0x390   :  { %2900 = vsyncpa [#allocation6], 1 }
 0x391   :  { %2902 = vsyncpa [#allocation6 + $0x1], 1 }

</bundles_post_ra>
